<compile_context>
chip_gen: v6e
topology: v6e:2x2x1
jax: 0.10.0
libtpu: 0.0.40
codegen_flags: <defaults>
</compile_context>

<pallas_src>
import numpy as np
import jax
import jax.numpy as jnp
from jax.experimental import pallas as pl
from jax.experimental.pallas import tpu as pltpu


# ----------------------------------------------------------------------------------
# Pallas kernel
# ----------------------------------------------------------------------------------
def build_cae_kernel(K, depth, L, Bt, offsets):
    assert K % 2 == 1, "kernel size must be odd (padding = K//2 keeps length)"
    p = K // 2
    Lw = L + 2 * K                                  # length after the torch.cat zero-extension
    Wd = ((Lw + 2 * p + 127) // 128) * 128          # lane-aligned working width (multiple of 128)
    m0 = (Wd - Lw) // 2                             # where the Lw-long signal starts
    assert m0 >= p and Wd - (m0 + Lw) >= p          # zero margins wide enough for roll wrap-around
    x_off = m0 + K                                  # raw input goes here (cat pads K zeros each side)
    out_off = m0 + K                                # final [:, K:-K] slice of the Lw-long result

    def elu(v):
        return jnp.where(v > 0, v, jnp.exp(jnp.minimum(v, 0.0)) - 1.0)

    def kernel(params_ref, x_ref, out_ref, stage):
        # params_ref : SMEM f32[P]      (all weights & biases, flat, static offsets)
        # x_ref      : VMEM f32[Bt, L]  (one independent signal per sublane)
        # out_ref    : VMEM f32[Bt, L]
        # stage      : VMEM f32[Bt, Wd] (used only twice: input zero-extension, final slice)

        # ---- read every weight / bias scalar from SMEM exactly once ----------------
        def wmat(off, cout, cin):
            return [[[params_ref[off + (co * cin + ci) * K + k] for k in range(K)]
                     for ci in range(cin)] for co in range(cout)]

        def bvec(off, cout):
            return [params_ref[off + co] for co in range(cout)]

        W0, B0 = wmat(offsets['w0'], 2, 1), bvec(offsets['b0'], 2)   # conv     (1 -> 2)
        W1, B1 = wmat(offsets['w1'], 2, 2), bvec(offsets['b1'], 2)   # conv1    (2 -> 2)
        W2, B2 = wmat(offsets['w2'], 2, 2), bvec(offsets['b2'], 2)   # conv2    (2 -> 2)
        W3, B3 = wmat(offsets['w3'], 2, 2), bvec(offsets['b3'], 2)   # t_conv1  (2 -> 2)
        W4, B4 = wmat(offsets['w4'], 2, 2), bvec(offsets['b4'], 2)   # t_conv2  (2 -> 2)
        W5, B5 = wmat(offsets['w5'], 1, 2), bvec(offsets['b5'], 1)   # t_conv   (2 -> 1)

        # ---- zero-extend the input inside the kernel (replaces host-side concat) ---
        stage[...] = jnp.zeros((Bt, Wd), jnp.float32)
        stage[:, x_off:x_off + L] = x_ref[...]
        h = [stage[...]]                                             # 1 channel, SSA value

        # mask recreating the conv zero-padding outside the valid window [m0, m0 + Lw)
        lane = jax.lax.broadcasted_iota(jnp.int32, (Bt, Wd), 1)
        valid = (lane >= m0) & (lane < m0 + Lw)

        def taps(hc):
            # tap_k[t] = hc[t + k - p]; zero margins (>= p wide) make roll wrap-around safe
            return [hc if k == p else pltpu.roll(hc, (p - k) % Wd, axis=1)
                    for k in range(K)]

        def conv_layer(h_in, Wl, Bl, activate):
            # "same" correlation: y[co, t] = b[co] + sum_{ci,k} h[ci, t + k - p] * w[co, ci, k]
            tps = [taps(hc) for hc in h_in]                          # [cin][K] rolled taps (XLU)
            outs = []
            for co in range(len(Wl)):
                acc = jnp.full((Bt, Wd), Bl[co], jnp.float32)        # init straight from bias splat
                for ci in range(len(h_in)):
                    for k in range(K):
                        acc = acc + Wl[co][ci][k] * tps[ci][k]
                if activate:
                    acc = elu(acc)
                outs.append(jnp.where(valid, acc, 0.0))              # keep margins exactly zero
            return outs

        # encoder
        h = conv_layer(h, W0, B0, activate=False)
        for i in range(depth):
            Wl, Bl = (W1, B1) if i < depth // 2 else (W2, B2)
            h = conv_layer(h, Wl, Bl, activate=True)
        # decoder (ConvTranspose1d layers expressed as correlations, see pack_params)
        for i in range(depth):
            Wl, Bl = (W3, B3) if i < depth // 2 else (W4, B4)
            h = conv_layer(h, Wl, Bl, activate=True)
        # final t_conv (2 -> 1), no activation
        h = conv_layer(h, W5, B5, activate=False)

        # final [:, K:-K] slice: route through the scratch once so the lane-offset
        # extraction is a plain, well-supported static ref slice.
        stage[...] = h[0]
        out_ref[...] = stage[:, out_off:out_off + L]

    return kernel, Wd


def cae_forward_pallas(x, params_flat, offsets, depth, K, batch_tile=8):
    """x: (N, 1, L) float32 — each signal handled independently (the module uses N=1).
    Returns (N, 1, L) float32."""
    N, C, L = int(x.shape[0]), int(x.shape[1]), int(x.shape[2])
    assert C == 1
    Bt = batch_tile
    Np = ((N + Bt - 1) // Bt) * Bt

    x2 = x.reshape(N, L).astype(jnp.float32)
    if Np != N:
        x2 = jnp.concatenate([x2, jnp.zeros((Np - N, L), jnp.float32)], axis=0)

    kernel, Wd = build_cae_kernel(K, depth, L, Bt, offsets)

    out = pl.pallas_call(
        kernel,
        out_shape=jax.ShapeDtypeStruct((Np, L), jnp.float32),
        grid=(Np // Bt,),
        in_specs=[
            pl.BlockSpec(memory_space=pltpu.MemorySpace.SMEM),       # flat params (scalars)
            pl.BlockSpec((Bt, L), lambda i: (i, 0)),                 # batch tile of signals
        ],
        out_specs=pl.BlockSpec((Bt, L), lambda i: (i, 0)),
        scratch_shapes=[pltpu.VMEM((Bt, Wd), jnp.float32)],
        compiler_params=pltpu.CompilerParams(
            dimension_semantics=("parallel",)),                      # batch tiles shard across TCs (v7x)
    )(params_flat, x2)

    return out[:N].reshape(N, 1, L)


# ----------------------------------------------------------------------------------
# Parameter setup (deterministic, PyTorch-like uniform init)
# ----------------------------------------------------------------------------------
def init_params(K, seed=0):
    keys = jax.random.split(jax.random.PRNGKey(seed), 12)

    def u(k, shape, fan_in):
        bound = 1.0 / np.sqrt(fan_in)
        return jax.random.uniform(k, shape, jnp.float32, -bound, bound)

    # Conv1d weights: (out, in, K).  ConvTranspose1d weights: (in, out, K).
    w0 = u(keys[0], (2, 1, K), 1 * K); b0 = u(keys[1], (2,), 1 * K)     # conv
    w1 = u(keys[2], (2, 2, K), 2 * K); b1 = u(keys[3], (2,), 2 * K)     # conv1
    w2 = u(keys[4], (2, 2, K), 2 * K); b2 = u(keys[5], (2,), 2 * K)     # conv2
    w3 = u(keys[6], (2, 2, K), 2 * K); b3 = u(keys[7], (2,), 2 * K)     # t_conv1
    w4 = u(keys[8], (2, 2, K), 2 * K); b4 = u(keys[9], (2,), 2 * K)     # t_conv2
    w5 = u(keys[10], (2, 1, K), 2 * K); b5 = u(keys[11], (1,), 2 * K)   # t_conv
    return (w0, b0, w1, b1, w2, b2, w3, b3, w4, b4, w5, b5)


def pack_params(params, K):
    """Convert ConvTranspose weights to equivalent correlation weights and flatten."""
    w0, b0, w1, b1, w2, b2, w3, b3, w4, b4, w5, b5 = params

    def t_to_conv(wt):   # (Cin, Cout, K) -> (Cout, Cin, K) flipped along K
        return jnp.flip(jnp.transpose(wt, (1, 0, 2)), axis=2)

    ordered = [
        ('w0', w0), ('b0', b0),
        ('w1', w1), ('b1', b1),
        ('w2', w2), ('b2', b2),
        ('w3', t_to_conv(w3)), ('b3', b3),
        ('w4', t_to_conv(w4)), ('b4', b4),
        ('w5', t_to_conv(w5)), ('b5', b5),
    ]
    offsets, flat, off = {}, [], 0
    for name, arr in ordered:
        offsets[name] = off
        off += int(np.prod(arr.shape))
        flat.append(arr.reshape(-1))
    return jnp.concatenate(flat).astype(jnp.float32), offsets


# ----------------------------------------------------------------------------------
# Pure-numpy reference implementing the PyTorch definitions directly
# ----------------------------------------------------------------------------------
def _conv1d_np(x, w, b, p):           # x:(Cin,Lin)  w:(Cout,Cin,K)
    cout, cin, K = w.shape
    Lin = x.shape[1]
    Lout = Lin + 2 * p - K + 1
    xp = np.pad(x, ((0, 0), (p, p)))
    y = np.zeros((cout, Lout))
    for co in range(cout):
        y[co] += b[co]
        for ci in range(cin):
            for k in range(K):
                y[co] += w[co, ci, k] * xp[ci, k:k + Lout]
    return y


def _convT1d_np(x, w, b, p):          # x:(Cin,Lin)  w:(Cin,Cout,K)
    cin, cout, K = w.shape
    Lin = x.shape[1]
    Lout = Lin - 1 + K - 2 * p
    y = np.zeros((cout, Lout))
    for co in range(cout):
        y[co] += b[co]
        for t in range(Lout):
            for ci in range(cin):
                for k in range(K):
                    s = t + p - k
                    if 0 <= s < Lin:
                        y[co, t] += x[ci, s] * w[ci, co, k]
    return y


def _elu_np(h):
    return np.where(h > 0, h, np.expm1(h))


def cae_ref_numpy(x_cl, params, depth, K):
    """x_cl: (1, L) single sample.  Returns (1, L)."""
    p = K // 2
    w0, b0, w1, b1, w2, b2, w3, b3, w4, b4, w5, b5 = [
        np.asarray(t, np.float64) for t in params
    ]
    xs = np.asarray(x_cl, np.float64)                 # (1, L)
    temp = np.zeros((1, K))
    h = np.concatenate([temp, xs, temp], axis=-1)     # (1, L + 2K)
    h = _conv1d_np(h, w0, b0, p)
    for i in range(depth):
        w, b = (w1, b1) if i < depth // 2 else (w2, b2)
        h = _elu_np(_conv1d_np(h, w, b, p))
    for i in range(depth):
        w, b = (w3, b3) if i < depth // 2 else (w4, b4)
        h = _elu_np(_convT1d_np(h, w, b, p))
    y = _convT1d_np(h, w5, b5, p)
    return y[:, K:-K]                                 # (1, L)


# ----------------------------------------------------------------------------------
if __name__ == "__main__":
    K = 3          # odd kernel size (padding = K//2 preserves length, as in the module)
    depth = 4
    L = 128        # signal length
    N = 16         # independent signals: 8 per vreg-sublane tile, grid of 2 batch tiles

    params = init_params(K, seed=0)
    params_flat, offsets = pack_params(params, K)

    x = jax.random.normal(jax.random.PRNGKey(0), (N, 1, L), jnp.float32)

    out = cae_forward_pallas(x, params_flat, offsets, depth, K)
    out = jax.block_until_ready(out)

    x_np = np.asarray(x)
    out_np = np.asarray(out)
    for n in range(N):
        ref = cae_ref_numpy(x_np[n], params, depth, K)
        np.testing.assert_allclose(out_np[n], ref, rtol=1e-3, atol=1e-4)

    print("KERNEL_OK")
</pallas_src>

<mosaic_0001>
module attributes {stable_mosaic.version = 11 : i64} {
  func.func @kernel(%arg0: i32, %arg1: memref<71xf32, #tpu.memory_space<smem>>, %arg2: memref<8x128xf32, #tpu.memory_space<vmem>>, %arg3: memref<8x128xf32, #tpu.memory_space<vmem>>, %arg4: memref<8x256xf32, #tpu.memory_space<vmem>>) attributes {dimension_semantics = [#tpu.dimension_semantics<parallel>], iteration_bounds = array<i64: 2>, scalar_prefetch = 0 : i64, scratch_operands = 1 : i64, tpu.core_type = #tpu.core_type<tc>, window_params = [{transform_indices = @transform_0, window_bounds = array<i64: 71>}, {transform_indices = @transform_1, window_bounds = array<i64: 8, 128>}, {transform_indices = @transform_2, window_bounds = array<i64: 8, 128>}]} {
    %c0 = arith.constant 0 : index
    %0 = memref.load %arg1[%c0] : memref<71xf32, #tpu.memory_space<smem>>
    %c1 = arith.constant 1 : index
    %1 = memref.load %arg1[%c1] : memref<71xf32, #tpu.memory_space<smem>>
    %c2 = arith.constant 2 : index
    %2 = memref.load %arg1[%c2] : memref<71xf32, #tpu.memory_space<smem>>
    %c3 = arith.constant 3 : index
    %3 = memref.load %arg1[%c3] : memref<71xf32, #tpu.memory_space<smem>>
    %c4 = arith.constant 4 : index
    %4 = memref.load %arg1[%c4] : memref<71xf32, #tpu.memory_space<smem>>
    %c5 = arith.constant 5 : index
    %5 = memref.load %arg1[%c5] : memref<71xf32, #tpu.memory_space<smem>>
    %c6 = arith.constant 6 : index
    %6 = memref.load %arg1[%c6] : memref<71xf32, #tpu.memory_space<smem>>
    %c7 = arith.constant 7 : index
    %7 = memref.load %arg1[%c7] : memref<71xf32, #tpu.memory_space<smem>>
    %c8 = arith.constant 8 : index
    %8 = memref.load %arg1[%c8] : memref<71xf32, #tpu.memory_space<smem>>
    %c9 = arith.constant 9 : index
    %9 = memref.load %arg1[%c9] : memref<71xf32, #tpu.memory_space<smem>>
    %c10 = arith.constant 10 : index
    %10 = memref.load %arg1[%c10] : memref<71xf32, #tpu.memory_space<smem>>
    %c11 = arith.constant 11 : index
    %11 = memref.load %arg1[%c11] : memref<71xf32, #tpu.memory_space<smem>>
    %c12 = arith.constant 12 : index
    %12 = memref.load %arg1[%c12] : memref<71xf32, #tpu.memory_space<smem>>
    %c13 = arith.constant 13 : index
    %13 = memref.load %arg1[%c13] : memref<71xf32, #tpu.memory_space<smem>>
    %c14 = arith.constant 14 : index
    %14 = memref.load %arg1[%c14] : memref<71xf32, #tpu.memory_space<smem>>
    %c15 = arith.constant 15 : index
    %15 = memref.load %arg1[%c15] : memref<71xf32, #tpu.memory_space<smem>>
    %c16 = arith.constant 16 : index
    %16 = memref.load %arg1[%c16] : memref<71xf32, #tpu.memory_space<smem>>
    %c17 = arith.constant 17 : index
    %17 = memref.load %arg1[%c17] : memref<71xf32, #tpu.memory_space<smem>>
    %c18 = arith.constant 18 : index
    %18 = memref.load %arg1[%c18] : memref<71xf32, #tpu.memory_space<smem>>
    %c19 = arith.constant 19 : index
    %19 = memref.load %arg1[%c19] : memref<71xf32, #tpu.memory_space<smem>>
    %c20 = arith.constant 20 : index
    %20 = memref.load %arg1[%c20] : memref<71xf32, #tpu.memory_space<smem>>
    %c21 = arith.constant 21 : index
    %21 = memref.load %arg1[%c21] : memref<71xf32, #tpu.memory_space<smem>>
    %c22 = arith.constant 22 : index
    %22 = memref.load %arg1[%c22] : memref<71xf32, #tpu.memory_space<smem>>
    %c23 = arith.constant 23 : index
    %23 = memref.load %arg1[%c23] : memref<71xf32, #tpu.memory_space<smem>>
    %c24 = arith.constant 24 : index
    %24 = memref.load %arg1[%c24] : memref<71xf32, #tpu.memory_space<smem>>
    %c25 = arith.constant 25 : index
    %25 = memref.load %arg1[%c25] : memref<71xf32, #tpu.memory_space<smem>>
    %c26 = arith.constant 26 : index
    %26 = memref.load %arg1[%c26] : memref<71xf32, #tpu.memory_space<smem>>
    %c27 = arith.constant 27 : index
    %27 = memref.load %arg1[%c27] : memref<71xf32, #tpu.memory_space<smem>>
    %c28 = arith.constant 28 : index
    %28 = memref.load %arg1[%c28] : memref<71xf32, #tpu.memory_space<smem>>
    %c29 = arith.constant 29 : index
    %29 = memref.load %arg1[%c29] : memref<71xf32, #tpu.memory_space<smem>>
    %c30 = arith.constant 30 : index
    %30 = memref.load %arg1[%c30] : memref<71xf32, #tpu.memory_space<smem>>
    %c31 = arith.constant 31 : index
    %31 = memref.load %arg1[%c31] : memref<71xf32, #tpu.memory_space<smem>>
    %c32 = arith.constant 32 : index
    %32 = memref.load %arg1[%c32] : memref<71xf32, #tpu.memory_space<smem>>
    %c33 = arith.constant 33 : index
    %33 = memref.load %arg1[%c33] : memref<71xf32, #tpu.memory_space<smem>>
    %c34 = arith.constant 34 : index
    %34 = memref.load %arg1[%c34] : memref<71xf32, #tpu.memory_space<smem>>
    %c35 = arith.constant 35 : index
    %35 = memref.load %arg1[%c35] : memref<71xf32, #tpu.memory_space<smem>>
    %c36 = arith.constant 36 : index
    %36 = memref.load %arg1[%c36] : memref<71xf32, #tpu.memory_space<smem>>
    %c37 = arith.constant 37 : index
    %37 = memref.load %arg1[%c37] : memref<71xf32, #tpu.memory_space<smem>>
    %c38 = arith.constant 38 : index
    %38 = memref.load %arg1[%c38] : memref<71xf32, #tpu.memory_space<smem>>
    %c39 = arith.constant 39 : index
    %39 = memref.load %arg1[%c39] : memref<71xf32, #tpu.memory_space<smem>>
    %c40 = arith.constant 40 : index
    %40 = memref.load %arg1[%c40] : memref<71xf32, #tpu.memory_space<smem>>
    %c41 = arith.constant 41 : index
    %41 = memref.load %arg1[%c41] : memref<71xf32, #tpu.memory_space<smem>>
    %c42 = arith.constant 42 : index
    %42 = memref.load %arg1[%c42] : memref<71xf32, #tpu.memory_space<smem>>
    %c43 = arith.constant 43 : index
    %43 = memref.load %arg1[%c43] : memref<71xf32, #tpu.memory_space<smem>>
    %c44 = arith.constant 44 : index
    %44 = memref.load %arg1[%c44] : memref<71xf32, #tpu.memory_space<smem>>
    %c45 = arith.constant 45 : index
    %45 = memref.load %arg1[%c45] : memref<71xf32, #tpu.memory_space<smem>>
    %c46 = arith.constant 46 : index
    %46 = memref.load %arg1[%c46] : memref<71xf32, #tpu.memory_space<smem>>
    %c47 = arith.constant 47 : index
    %47 = memref.load %arg1[%c47] : memref<71xf32, #tpu.memory_space<smem>>
    %c48 = arith.constant 48 : index
    %48 = memref.load %arg1[%c48] : memref<71xf32, #tpu.memory_space<smem>>
    %c49 = arith.constant 49 : index
    %49 = memref.load %arg1[%c49] : memref<71xf32, #tpu.memory_space<smem>>
    %c50 = arith.constant 50 : index
    %50 = memref.load %arg1[%c50] : memref<71xf32, #tpu.memory_space<smem>>
    %c51 = arith.constant 51 : index
    %51 = memref.load %arg1[%c51] : memref<71xf32, #tpu.memory_space<smem>>
    %c52 = arith.constant 52 : index
    %52 = memref.load %arg1[%c52] : memref<71xf32, #tpu.memory_space<smem>>
    %c53 = arith.constant 53 : index
    %53 = memref.load %arg1[%c53] : memref<71xf32, #tpu.memory_space<smem>>
    %c54 = arith.constant 54 : index
    %54 = memref.load %arg1[%c54] : memref<71xf32, #tpu.memory_space<smem>>
    %c55 = arith.constant 55 : index
    %55 = memref.load %arg1[%c55] : memref<71xf32, #tpu.memory_space<smem>>
    %c56 = arith.constant 56 : index
    %56 = memref.load %arg1[%c56] : memref<71xf32, #tpu.memory_space<smem>>
    %c57 = arith.constant 57 : index
    %57 = memref.load %arg1[%c57] : memref<71xf32, #tpu.memory_space<smem>>
    %c58 = arith.constant 58 : index
    %58 = memref.load %arg1[%c58] : memref<71xf32, #tpu.memory_space<smem>>
    %c59 = arith.constant 59 : index
    %59 = memref.load %arg1[%c59] : memref<71xf32, #tpu.memory_space<smem>>
    %c60 = arith.constant 60 : index
    %60 = memref.load %arg1[%c60] : memref<71xf32, #tpu.memory_space<smem>>
    %c61 = arith.constant 61 : index
    %61 = memref.load %arg1[%c61] : memref<71xf32, #tpu.memory_space<smem>>
    %c62 = arith.constant 62 : index
    %62 = memref.load %arg1[%c62] : memref<71xf32, #tpu.memory_space<smem>>
    %c63 = arith.constant 63 : index
    %63 = memref.load %arg1[%c63] : memref<71xf32, #tpu.memory_space<smem>>
    %c64 = arith.constant 64 : index
    %64 = memref.load %arg1[%c64] : memref<71xf32, #tpu.memory_space<smem>>
    %c65 = arith.constant 65 : index
    %65 = memref.load %arg1[%c65] : memref<71xf32, #tpu.memory_space<smem>>
    %c66 = arith.constant 66 : index
    %66 = memref.load %arg1[%c66] : memref<71xf32, #tpu.memory_space<smem>>
    %c67 = arith.constant 67 : index
    %67 = memref.load %arg1[%c67] : memref<71xf32, #tpu.memory_space<smem>>
    %c68 = arith.constant 68 : index
    %68 = memref.load %arg1[%c68] : memref<71xf32, #tpu.memory_space<smem>>
    %c69 = arith.constant 69 : index
    %69 = memref.load %arg1[%c69] : memref<71xf32, #tpu.memory_space<smem>>
    %c70 = arith.constant 70 : index
    %70 = memref.load %arg1[%c70] : memref<71xf32, #tpu.memory_space<smem>>
    %cst = arith.constant 0.000000e+00 : f32
    %71 = vector.broadcast %cst : f32 to vector<8x256xf32>
    %c0_0 = arith.constant 0 : index
    %c0_1 = arith.constant 0 : index
    %72 = vector.load %arg4[%c0_0, %c0_1] : memref<8x256xf32, #tpu.memory_space<vmem>>, vector<8x256xf32>
    tpu.vector_store %arg4[%c0_0, %c0_1], %71 {strides = array<i32>} : memref<8x256xf32, #tpu.memory_space<vmem>>, vector<8x256xf32>,
    %c0_2 = arith.constant 0 : index
    %c0_3 = arith.constant 0 : index
    %73 = vector.load %arg2[%c0_2, %c0_3] : memref<8x128xf32, #tpu.memory_space<vmem>>, vector<8x128xf32>
    %c0_4 = arith.constant 0 : index
    %c64_5 = arith.constant 64 : index
    %74 = vector.load %arg4[%c0_4, %c64_5] : memref<8x256xf32, #tpu.memory_space<vmem>>, vector<8x128xf32>
    tpu.vector_store %arg4[%c0_4, %c64_5], %73 {strides = array<i32>} : memref<8x256xf32, #tpu.memory_space<vmem>>, vector<8x128xf32>,
    %c0_6 = arith.constant 0 : index
    %c0_7 = arith.constant 0 : index
    %75 = vector.load %arg4[%c0_6, %c0_7] : memref<8x256xf32, #tpu.memory_space<vmem>>, vector<8x256xf32>
    %76 = tpu.iota {dimensions = array<i32: 1>} : vector<8x256xi32>
    %c61_i32 = arith.constant 61 : i32
    %77 = vector.broadcast %c61_i32 : i32 to vector<8x256xi32>
    %78 = arith.cmpi sge, %76, %77 : vector<8x256xi32>
    %c195_i32 = arith.constant 195 : i32
    %79 = vector.broadcast %c195_i32 : i32 to vector<8x256xi32>
    %80 = arith.cmpi slt, %76, %79 : vector<8x256xi32>
    %81 = arith.andi %78, %80 : vector<8x256xi1>
    %c1_i32 = arith.constant 1 : i32
    %82 = tpu.dynamic_rotate %75 by %c1_i32 dim 1 : vector<8x256xf32>, i32 -> vector<8x256xf32>
    %c255_i32 = arith.constant 255 : i32
    %83 = tpu.dynamic_rotate %75 by %c255_i32 dim 1 : vector<8x256xf32>, i32 -> vector<8x256xf32>
    %84 = vector.broadcast %6 : f32 to vector<8x256xf32>
    %85 = vector.broadcast %0 : f32 to vector<8x256xf32>
    %86 = arith.mulf %85, %82 : vector<8x256xf32>
    %87 = arith.addf %84, %86 : vector<8x256xf32>
    %88 = vector.broadcast %1 : f32 to vector<8x256xf32>
    %89 = arith.mulf %88, %75 : vector<8x256xf32>
    %90 = arith.addf %87, %89 : vector<8x256xf32>
    %91 = vector.broadcast %2 : f32 to vector<8x256xf32>
    %92 = arith.mulf %91, %83 : vector<8x256xf32>
    %93 = arith.addf %90, %92 : vector<8x256xf32>
    %cst_8 = arith.constant 0.000000e+00 : f32
    %94 = vector.broadcast %cst_8 : f32 to vector<8x256xf32>
    %95 = arith.select %81, %93, %94 : vector<8x256xi1>, vector<8x256xf32>
    %96 = vector.broadcast %7 : f32 to vector<8x256xf32>
    %97 = vector.broadcast %3 : f32 to vector<8x256xf32>
    %98 = arith.mulf %97, %82 : vector<8x256xf32>
    %99 = arith.addf %96, %98 : vector<8x256xf32>
    %100 = vector.broadcast %4 : f32 to vector<8x256xf32>
    %101 = arith.mulf %100, %75 : vector<8x256xf32>
    %102 = arith.addf %99, %101 : vector<8x256xf32>
    %103 = vector.broadcast %5 : f32 to vector<8x256xf32>
    %104 = arith.mulf %103, %83 : vector<8x256xf32>
    %105 = arith.addf %102, %104 : vector<8x256xf32>
    %cst_9 = arith.constant 0.000000e+00 : f32
    %106 = vector.broadcast %cst_9 : f32 to vector<8x256xf32>
    %107 = arith.select %81, %105, %106 : vector<8x256xi1>, vector<8x256xf32>
    %c1_i32_10 = arith.constant 1 : i32
    %108 = tpu.dynamic_rotate %95 by %c1_i32_10 dim 1 : vector<8x256xf32>, i32 -> vector<8x256xf32>
    %c255_i32_11 = arith.constant 255 : i32
    %109 = tpu.dynamic_rotate %95 by %c255_i32_11 dim 1 : vector<8x256xf32>, i32 -> vector<8x256xf32>
    %c1_i32_12 = arith.constant 1 : i32
    %110 = tpu.dynamic_rotate %107 by %c1_i32_12 dim 1 : vector<8x256xf32>, i32 -> vector<8x256xf32>
    %c255_i32_13 = arith.constant 255 : i32
    %111 = tpu.dynamic_rotate %107 by %c255_i32_13 dim 1 : vector<8x256xf32>, i32 -> vector<8x256xf32>
    %112 = vector.broadcast %20 : f32 to vector<8x256xf32>
    %113 = vector.broadcast %8 : f32 to vector<8x256xf32>
    %114 = arith.mulf %113, %108 : vector<8x256xf32>
    %115 = arith.addf %112, %114 : vector<8x256xf32>
    %116 = vector.broadcast %9 : f32 to vector<8x256xf32>
    %117 = arith.mulf %116, %95 : vector<8x256xf32>
    %118 = arith.addf %115, %117 : vector<8x256xf32>
    %119 = vector.broadcast %10 : f32 to vector<8x256xf32>
    %120 = arith.mulf %119, %109 : vector<8x256xf32>
    %121 = arith.addf %118, %120 : vector<8x256xf32>
    %122 = vector.broadcast %11 : f32 to vector<8x256xf32>
    %123 = arith.mulf %122, %110 : vector<8x256xf32>
    %124 = arith.addf %121, %123 : vector<8x256xf32>
    %125 = vector.broadcast %12 : f32 to vector<8x256xf32>
    %126 = arith.mulf %125, %107 : vector<8x256xf32>
    %127 = arith.addf %124, %126 : vector<8x256xf32>
    %128 = vector.broadcast %13 : f32 to vector<8x256xf32>
    %129 = arith.mulf %128, %111 : vector<8x256xf32>
    %130 = arith.addf %127, %129 : vector<8x256xf32>
    %cst_14 = arith.constant 0.000000e+00 : f32
    %131 = vector.broadcast %cst_14 : f32 to vector<8x256xf32>
    %132 = arith.cmpf ogt, %130, %131 : vector<8x256xf32>
    %cst_15 = arith.constant 0.000000e+00 : f32
    %133 = vector.broadcast %cst_15 : f32 to vector<8x256xf32>
    %134 = arith.minimumf %130, %133 : vector<8x256xf32>
    %135 = math.exp %134 : vector<8x256xf32>
    %cst_16 = arith.constant 1.000000e+00 : f32
    %136 = vector.broadcast %cst_16 : f32 to vector<8x256xf32>
    %137 = arith.subf %135, %136 : vector<8x256xf32>
    %138 = arith.select %132, %130, %137 : vector<8x256xi1>, vector<8x256xf32>
    %cst_17 = arith.constant 0.000000e+00 : f32
    %139 = vector.broadcast %cst_17 : f32 to vector<8x256xf32>
    %140 = arith.select %81, %138, %139 : vector<8x256xi1>, vector<8x256xf32>
    %141 = vector.broadcast %21 : f32 to vector<8x256xf32>
    %142 = vector.broadcast %14 : f32 to vector<8x256xf32>
    %143 = arith.mulf %142, %108 : vector<8x256xf32>
    %144 = arith.addf %141, %143 : vector<8x256xf32>
    %145 = vector.broadcast %15 : f32 to vector<8x256xf32>
    %146 = arith.mulf %145, %95 : vector<8x256xf32>
    %147 = arith.addf %144, %146 : vector<8x256xf32>
    %148 = vector.broadcast %16 : f32 to vector<8x256xf32>
    %149 = arith.mulf %148, %109 : vector<8x256xf32>
    %150 = arith.addf %147, %149 : vector<8x256xf32>
    %151 = vector.broadcast %17 : f32 to vector<8x256xf32>
    %152 = arith.mulf %151, %110 : vector<8x256xf32>
    %153 = arith.addf %150, %152 : vector<8x256xf32>
    %154 = vector.broadcast %18 : f32 to vector<8x256xf32>
    %155 = arith.mulf %154, %107 : vector<8x256xf32>
    %156 = arith.addf %153, %155 : vector<8x256xf32>
    %157 = vector.broadcast %19 : f32 to vector<8x256xf32>
    %158 = arith.mulf %157, %111 : vector<8x256xf32>
    %159 = arith.addf %156, %158 : vector<8x256xf32>
    %cst_18 = arith.constant 0.000000e+00 : f32
    %160 = vector.broadcast %cst_18 : f32 to vector<8x256xf32>
    %161 = arith.cmpf ogt, %159, %160 : vector<8x256xf32>
    %cst_19 = arith.constant 0.000000e+00 : f32
    %162 = vector.broadcast %cst_19 : f32 to vector<8x256xf32>
    %163 = arith.minimumf %159, %162 : vector<8x256xf32>
    %164 = math.exp %163 : vector<8x256xf32>
    %cst_20 = arith.constant 1.000000e+00 : f32
    %165 = vector.broadcast %cst_20 : f32 to vector<8x256xf32>
    %166 = arith.subf %164, %165 : vector<8x256xf32>
    %167 = arith.select %161, %159, %166 : vector<8x256xi1>, vector<8x256xf32>
    %cst_21 = arith.constant 0.000000e+00 : f32
    %168 = vector.broadcast %cst_21 : f32 to vector<8x256xf32>
    %169 = arith.select %81, %167, %168 : vector<8x256xi1>, vector<8x256xf32>
    %c1_i32_22 = arith.constant 1 : i32
    %170 = tpu.dynamic_rotate %140 by %c1_i32_22 dim 1 : vector<8x256xf32>, i32 -> vector<8x256xf32>
    %c255_i32_23 = arith.constant 255 : i32
    %171 = tpu.dynamic_rotate %140 by %c255_i32_23 dim 1 : vector<8x256xf32>, i32 -> vector<8x256xf32>
    %c1_i32_24 = arith.constant 1 : i32
    %172 = tpu.dynamic_rotate %169 by %c1_i32_24 dim 1 : vector<8x256xf32>, i32 -> vector<8x256xf32>
    %c255_i32_25 = arith.constant 255 : i32
    %173 = tpu.dynamic_rotate %169 by %c255_i32_25 dim 1 : vector<8x256xf32>, i32 -> vector<8x256xf32>
    %174 = vector.broadcast %20 : f32 to vector<8x256xf32>
    %175 = vector.broadcast %8 : f32 to vector<8x256xf32>
    %176 = arith.mulf %175, %170 : vector<8x256xf32>
    %177 = arith.addf %174, %176 : vector<8x256xf32>
    %178 = vector.broadcast %9 : f32 to vector<8x256xf32>
    %179 = arith.mulf %178, %140 : vector<8x256xf32>
    %180 = arith.addf %177, %179 : vector<8x256xf32>
    %181 = vector.broadcast %10 : f32 to vector<8x256xf32>
    %182 = arith.mulf %181, %171 : vector<8x256xf32>
    %183 = arith.addf %180, %182 : vector<8x256xf32>
    %184 = vector.broadcast %11 : f32 to vector<8x256xf32>
    %185 = arith.mulf %184, %172 : vector<8x256xf32>
    %186 = arith.addf %183, %185 : vector<8x256xf32>
    %187 = vector.broadcast %12 : f32 to vector<8x256xf32>
    %188 = arith.mulf %187, %169 : vector<8x256xf32>
    %189 = arith.addf %186, %188 : vector<8x256xf32>
    %190 = vector.broadcast %13 : f32 to vector<8x256xf32>
    %191 = arith.mulf %190, %173 : vector<8x256xf32>
    %192 = arith.addf %189, %191 : vector<8x256xf32>
    %cst_26 = arith.constant 0.000000e+00 : f32
    %193 = vector.broadcast %cst_26 : f32 to vector<8x256xf32>
    %194 = arith.cmpf ogt, %192, %193 : vector<8x256xf32>
    %cst_27 = arith.constant 0.000000e+00 : f32
    %195 = vector.broadcast %cst_27 : f32 to vector<8x256xf32>
    %196 = arith.minimumf %192, %195 : vector<8x256xf32>
    %197 = math.exp %196 : vector<8x256xf32>
    %cst_28 = arith.constant 1.000000e+00 : f32
    %198 = vector.broadcast %cst_28 : f32 to vector<8x256xf32>
    %199 = arith.subf %197, %198 : vector<8x256xf32>
    %200 = arith.select %194, %192, %199 : vector<8x256xi1>, vector<8x256xf32>
    %cst_29 = arith.constant 0.000000e+00 : f32
    %201 = vector.broadcast %cst_29 : f32 to vector<8x256xf32>
    %202 = arith.select %81, %200, %201 : vector<8x256xi1>, vector<8x256xf32>
    %203 = vector.broadcast %21 : f32 to vector<8x256xf32>
    %204 = vector.broadcast %14 : f32 to vector<8x256xf32>
    %205 = arith.mulf %204, %170 : vector<8x256xf32>
    %206 = arith.addf %203, %205 : vector<8x256xf32>
    %207 = vector.broadcast %15 : f32 to vector<8x256xf32>
    %208 = arith.mulf %207, %140 : vector<8x256xf32>
    %209 = arith.addf %206, %208 : vector<8x256xf32>
    %210 = vector.broadcast %16 : f32 to vector<8x256xf32>
    %211 = arith.mulf %210, %171 : vector<8x256xf32>
    %212 = arith.addf %209, %211 : vector<8x256xf32>
    %213 = vector.broadcast %17 : f32 to vector<8x256xf32>
    %214 = arith.mulf %213, %172 : vector<8x256xf32>
    %215 = arith.addf %212, %214 : vector<8x256xf32>
    %216 = vector.broadcast %18 : f32 to vector<8x256xf32>
    %217 = arith.mulf %216, %169 : vector<8x256xf32>
    %218 = arith.addf %215, %217 : vector<8x256xf32>
    %219 = vector.broadcast %19 : f32 to vector<8x256xf32>
    %220 = arith.mulf %219, %173 : vector<8x256xf32>
    %221 = arith.addf %218, %220 : vector<8x256xf32>
    %cst_30 = arith.constant 0.000000e+00 : f32
    %222 = vector.broadcast %cst_30 : f32 to vector<8x256xf32>
    %223 = arith.cmpf ogt, %221, %222 : vector<8x256xf32>
    %cst_31 = arith.constant 0.000000e+00 : f32
    %224 = vector.broadcast %cst_31 : f32 to vector<8x256xf32>
    %225 = arith.minimumf %221, %224 : vector<8x256xf32>
    %226 = math.exp %225 : vector<8x256xf32>
    %cst_32 = arith.constant 1.000000e+00 : f32
    %227 = vector.broadcast %cst_32 : f32 to vector<8x256xf32>
    %228 = arith.subf %226, %227 : vector<8x256xf32>
    %229 = arith.select %223, %221, %228 : vector<8x256xi1>, vector<8x256xf32>
    %cst_33 = arith.constant 0.000000e+00 : f32
    %230 = vector.broadcast %cst_33 : f32 to vector<8x256xf32>
    %231 = arith.select %81, %229, %230 : vector<8x256xi1>, vector<8x256xf32>
    %c1_i32_34 = arith.constant 1 : i32
    %232 = tpu.dynamic_rotate %202 by %c1_i32_34 dim 1 : vector<8x256xf32>, i32 -> vector<8x256xf32>
    %c255_i32_35 = arith.constant 255 : i32
    %233 = tpu.dynamic_rotate %202 by %c255_i32_35 dim 1 : vector<8x256xf32>, i32 -> vector<8x256xf32>
    %c1_i32_36 = arith.constant 1 : i32
    %234 = tpu.dynamic_rotate %231 by %c1_i32_36 dim 1 : vector<8x256xf32>, i32 -> vector<8x256xf32>
    %c255_i32_37 = arith.constant 255 : i32
    %235 = tpu.dynamic_rotate %231 by %c255_i32_37 dim 1 : vector<8x256xf32>, i32 -> vector<8x256xf32>
    %236 = vector.broadcast %34 : f32 to vector<8x256xf32>
    %237 = vector.broadcast %22 : f32 to vector<8x256xf32>
    %238 = arith.mulf %237, %232 : vector<8x256xf32>
    %239 = arith.addf %236, %238 : vector<8x256xf32>
    %240 = vector.broadcast %23 : f32 to vector<8x256xf32>
    %241 = arith.mulf %240, %202 : vector<8x256xf32>
    %242 = arith.addf %239, %241 : vector<8x256xf32>
    %243 = vector.broadcast %24 : f32 to vector<8x256xf32>
    %244 = arith.mulf %243, %233 : vector<8x256xf32>
    %245 = arith.addf %242, %244 : vector<8x256xf32>
    %246 = vector.broadcast %25 : f32 to vector<8x256xf32>
    %247 = arith.mulf %246, %234 : vector<8x256xf32>
    %248 = arith.addf %245, %247 : vector<8x256xf32>
    %249 = vector.broadcast %26 : f32 to vector<8x256xf32>
    %250 = arith.mulf %249, %231 : vector<8x256xf32>
    %251 = arith.addf %248, %250 : vector<8x256xf32>
    %252 = vector.broadcast %27 : f32 to vector<8x256xf32>
    %253 = arith.mulf %252, %235 : vector<8x256xf32>
    %254 = arith.addf %251, %253 : vector<8x256xf32>
    %cst_38 = arith.constant 0.000000e+00 : f32
    %255 = vector.broadcast %cst_38 : f32 to vector<8x256xf32>
    %256 = arith.cmpf ogt, %254, %255 : vector<8x256xf32>
    %cst_39 = arith.constant 0.000000e+00 : f32
    %257 = vector.broadcast %cst_39 : f32 to vector<8x256xf32>
    %258 = arith.minimumf %254, %257 : vector<8x256xf32>
    %259 = math.exp %258 : vector<8x256xf32>
    %cst_40 = arith.constant 1.000000e+00 : f32
    %260 = vector.broadcast %cst_40 : f32 to vector<8x256xf32>
    %261 = arith.subf %259, %260 : vector<8x256xf32>
    %262 = arith.select %256, %254, %261 : vector<8x256xi1>, vector<8x256xf32>
    %cst_41 = arith.constant 0.000000e+00 : f32
    %263 = vector.broadcast %cst_41 : f32 to vector<8x256xf32>
    %264 = arith.select %81, %262, %263 : vector<8x256xi1>, vector<8x256xf32>
    %265 = vector.broadcast %35 : f32 to vector<8x256xf32>
    %266 = vector.broadcast %28 : f32 to vector<8x256xf32>
    %267 = arith.mulf %266, %232 : vector<8x256xf32>
    %268 = arith.addf %265, %267 : vector<8x256xf32>
    %269 = vector.broadcast %29 : f32 to vector<8x256xf32>
    %270 = arith.mulf %269, %202 : vector<8x256xf32>
    %271 = arith.addf %268, %270 : vector<8x256xf32>
    %272 = vector.broadcast %30 : f32 to vector<8x256xf32>
    %273 = arith.mulf %272, %233 : vector<8x256xf32>
    %274 = arith.addf %271, %273 : vector<8x256xf32>
    %275 = vector.broadcast %31 : f32 to vector<8x256xf32>
    %276 = arith.mulf %275, %234 : vector<8x256xf32>
    %277 = arith.addf %274, %276 : vector<8x256xf32>
    %278 = vector.broadcast %32 : f32 to vector<8x256xf32>
    %279 = arith.mulf %278, %231 : vector<8x256xf32>
    %280 = arith.addf %277, %279 : vector<8x256xf32>
    %281 = vector.broadcast %33 : f32 to vector<8x256xf32>
    %282 = arith.mulf %281, %235 : vector<8x256xf32>
    %283 = arith.addf %280, %282 : vector<8x256xf32>
    %cst_42 = arith.constant 0.000000e+00 : f32
    %284 = vector.broadcast %cst_42 : f32 to vector<8x256xf32>
    %285 = arith.cmpf ogt, %283, %284 : vector<8x256xf32>
    %cst_43 = arith.constant 0.000000e+00 : f32
    %286 = vector.broadcast %cst_43 : f32 to vector<8x256xf32>
    %287 = arith.minimumf %283, %286 : vector<8x256xf32>
    %288 = math.exp %287 : vector<8x256xf32>
    %cst_44 = arith.constant 1.000000e+00 : f32
    %289 = vector.broadcast %cst_44 : f32 to vector<8x256xf32>
    %290 = arith.subf %288, %289 : vector<8x256xf32>
    %291 = arith.select %285, %283, %290 : vector<8x256xi1>, vector<8x256xf32>
    %cst_45 = arith.constant 0.000000e+00 : f32
    %292 = vector.broadcast %cst_45 : f32 to vector<8x256xf32>
    %293 = arith.select %81, %291, %292 : vector<8x256xi1>, vector<8x256xf32>
    %c1_i32_46 = arith.constant 1 : i32
    %294 = tpu.dynamic_rotate %264 by %c1_i32_46 dim 1 : vector<8x256xf32>, i32 -> vector<8x256xf32>
    %c255_i32_47 = arith.constant 255 : i32
    %295 = tpu.dynamic_rotate %264 by %c255_i32_47 dim 1 : vector<8x256xf32>, i32 -> vector<8x256xf32>
    %c1_i32_48 = arith.constant 1 : i32
    %296 = tpu.dynamic_rotate %293 by %c1_i32_48 dim 1 : vector<8x256xf32>, i32 -> vector<8x256xf32>
    %c255_i32_49 = arith.constant 255 : i32
    %297 = tpu.dynamic_rotate %293 by %c255_i32_49 dim 1 : vector<8x256xf32>, i32 -> vector<8x256xf32>
    %298 = vector.broadcast %34 : f32 to vector<8x256xf32>
    %299 = vector.broadcast %22 : f32 to vector<8x256xf32>
    %300 = arith.mulf %299, %294 : vector<8x256xf32>
    %301 = arith.addf %298, %300 : vector<8x256xf32>
    %302 = vector.broadcast %23 : f32 to vector<8x256xf32>
    %303 = arith.mulf %302, %264 : vector<8x256xf32>
    %304 = arith.addf %301, %303 : vector<8x256xf32>
    %305 = vector.broadcast %24 : f32 to vector<8x256xf32>
    %306 = arith.mulf %305, %295 : vector<8x256xf32>
    %307 = arith.addf %304, %306 : vector<8x256xf32>
    %308 = vector.broadcast %25 : f32 to vector<8x256xf32>
    %309 = arith.mulf %308, %296 : vector<8x256xf32>
    %310 = arith.addf %307, %309 : vector<8x256xf32>
    %311 = vector.broadcast %26 : f32 to vector<8x256xf32>
    %312 = arith.mulf %311, %293 : vector<8x256xf32>
    %313 = arith.addf %310, %312 : vector<8x256xf32>
    %314 = vector.broadcast %27 : f32 to vector<8x256xf32>
    %315 = arith.mulf %314, %297 : vector<8x256xf32>
    %316 = arith.addf %313, %315 : vector<8x256xf32>
    %cst_50 = arith.constant 0.000000e+00 : f32
    %317 = vector.broadcast %cst_50 : f32 to vector<8x256xf32>
    %318 = arith.cmpf ogt, %316, %317 : vector<8x256xf32>
    %cst_51 = arith.constant 0.000000e+00 : f32
    %319 = vector.broadcast %cst_51 : f32 to vector<8x256xf32>
    %320 = arith.minimumf %316, %319 : vector<8x256xf32>
    %321 = math.exp %320 : vector<8x256xf32>
    %cst_52 = arith.constant 1.000000e+00 : f32
    %322 = vector.broadcast %cst_52 : f32 to vector<8x256xf32>
    %323 = arith.subf %321, %322 : vector<8x256xf32>
    %324 = arith.select %318, %316, %323 : vector<8x256xi1>, vector<8x256xf32>
    %cst_53 = arith.constant 0.000000e+00 : f32
    %325 = vector.broadcast %cst_53 : f32 to vector<8x256xf32>
    %326 = arith.select %81, %324, %325 : vector<8x256xi1>, vector<8x256xf32>
    %327 = vector.broadcast %35 : f32 to vector<8x256xf32>
    %328 = vector.broadcast %28 : f32 to vector<8x256xf32>
    %329 = arith.mulf %328, %294 : vector<8x256xf32>
    %330 = arith.addf %327, %329 : vector<8x256xf32>
    %331 = vector.broadcast %29 : f32 to vector<8x256xf32>
    %332 = arith.mulf %331, %264 : vector<8x256xf32>
    %333 = arith.addf %330, %332 : vector<8x256xf32>
    %334 = vector.broadcast %30 : f32 to vector<8x256xf32>
    %335 = arith.mulf %334, %295 : vector<8x256xf32>
    %336 = arith.addf %333, %335 : vector<8x256xf32>
    %337 = vector.broadcast %31 : f32 to vector<8x256xf32>
    %338 = arith.mulf %337, %296 : vector<8x256xf32>
    %339 = arith.addf %336, %338 : vector<8x256xf32>
    %340 = vector.broadcast %32 : f32 to vector<8x256xf32>
    %341 = arith.mulf %340, %293 : vector<8x256xf32>
    %342 = arith.addf %339, %341 : vector<8x256xf32>
    %343 = vector.broadcast %33 : f32 to vector<8x256xf32>
    %344 = arith.mulf %343, %297 : vector<8x256xf32>
    %345 = arith.addf %342, %344 : vector<8x256xf32>
    %cst_54 = arith.constant 0.000000e+00 : f32
    %346 = vector.broadcast %cst_54 : f32 to vector<8x256xf32>
    %347 = arith.cmpf ogt, %345, %346 : vector<8x256xf32>
    %cst_55 = arith.constant 0.000000e+00 : f32
    %348 = vector.broadcast %cst_55 : f32 to vector<8x256xf32>
    %349 = arith.minimumf %345, %348 : vector<8x256xf32>
    %350 = math.exp %349 : vector<8x256xf32>
    %cst_56 = arith.constant 1.000000e+00 : f32
    %351 = vector.broadcast %cst_56 : f32 to vector<8x256xf32>
    %352 = arith.subf %350, %351 : vector<8x256xf32>
    %353 = arith.select %347, %345, %352 : vector<8x256xi1>, vector<8x256xf32>
    %cst_57 = arith.constant 0.000000e+00 : f32
    %354 = vector.broadcast %cst_57 : f32 to vector<8x256xf32>
    %355 = arith.select %81, %353, %354 : vector<8x256xi1>, vector<8x256xf32>
    %c1_i32_58 = arith.constant 1 : i32
    %356 = tpu.dynamic_rotate %326 by %c1_i32_58 dim 1 : vector<8x256xf32>, i32 -> vector<8x256xf32>
    %c255_i32_59 = arith.constant 255 : i32
    %357 = tpu.dynamic_rotate %326 by %c255_i32_59 dim 1 : vector<8x256xf32>, i32 -> vector<8x256xf32>
    %c1_i32_60 = arith.constant 1 : i32
    %358 = tpu.dynamic_rotate %355 by %c1_i32_60 dim 1 : vector<8x256xf32>, i32 -> vector<8x256xf32>
    %c255_i32_61 = arith.constant 255 : i32
    %359 = tpu.dynamic_rotate %355 by %c255_i32_61 dim 1 : vector<8x256xf32>, i32 -> vector<8x256xf32>
    %360 = vector.broadcast %48 : f32 to vector<8x256xf32>
    %361 = vector.broadcast %36 : f32 to vector<8x256xf32>
    %362 = arith.mulf %361, %356 : vector<8x256xf32>
    %363 = arith.addf %360, %362 : vector<8x256xf32>
    %364 = vector.broadcast %37 : f32 to vector<8x256xf32>
    %365 = arith.mulf %364, %326 : vector<8x256xf32>
    %366 = arith.addf %363, %365 : vector<8x256xf32>
    %367 = vector.broadcast %38 : f32 to vector<8x256xf32>
    %368 = arith.mulf %367, %357 : vector<8x256xf32>
    %369 = arith.addf %366, %368 : vector<8x256xf32>
    %370 = vector.broadcast %39 : f32 to vector<8x256xf32>
    %371 = arith.mulf %370, %358 : vector<8x256xf32>
    %372 = arith.addf %369, %371 : vector<8x256xf32>
    %373 = vector.broadcast %40 : f32 to vector<8x256xf32>
    %374 = arith.mulf %373, %355 : vector<8x256xf32>
    %375 = arith.addf %372, %374 : vector<8x256xf32>
    %376 = vector.broadcast %41 : f32 to vector<8x256xf32>
    %377 = arith.mulf %376, %359 : vector<8x256xf32>
    %378 = arith.addf %375, %377 : vector<8x256xf32>
    %cst_62 = arith.constant 0.000000e+00 : f32
    %379 = vector.broadcast %cst_62 : f32 to vector<8x256xf32>
    %380 = arith.cmpf ogt, %378, %379 : vector<8x256xf32>
    %cst_63 = arith.constant 0.000000e+00 : f32
    %381 = vector.broadcast %cst_63 : f32 to vector<8x256xf32>
    %382 = arith.minimumf %378, %381 : vector<8x256xf32>
    %383 = math.exp %382 : vector<8x256xf32>
    %cst_64 = arith.constant 1.000000e+00 : f32
    %384 = vector.broadcast %cst_64 : f32 to vector<8x256xf32>
    %385 = arith.subf %383, %384 : vector<8x256xf32>
    %386 = arith.select %380, %378, %385 : vector<8x256xi1>, vector<8x256xf32>
    %cst_65 = arith.constant 0.000000e+00 : f32
    %387 = vector.broadcast %cst_65 : f32 to vector<8x256xf32>
    %388 = arith.select %81, %386, %387 : vector<8x256xi1>, vector<8x256xf32>
    %389 = vector.broadcast %49 : f32 to vector<8x256xf32>
    %390 = vector.broadcast %42 : f32 to vector<8x256xf32>
    %391 = arith.mulf %390, %356 : vector<8x256xf32>
    %392 = arith.addf %389, %391 : vector<8x256xf32>
    %393 = vector.broadcast %43 : f32 to vector<8x256xf32>
    %394 = arith.mulf %393, %326 : vector<8x256xf32>
    %395 = arith.addf %392, %394 : vector<8x256xf32>
    %396 = vector.broadcast %44 : f32 to vector<8x256xf32>
    %397 = arith.mulf %396, %357 : vector<8x256xf32>
    %398 = arith.addf %395, %397 : vector<8x256xf32>
    %399 = vector.broadcast %45 : f32 to vector<8x256xf32>
    %400 = arith.mulf %399, %358 : vector<8x256xf32>
    %401 = arith.addf %398, %400 : vector<8x256xf32>
    %402 = vector.broadcast %46 : f32 to vector<8x256xf32>
    %403 = arith.mulf %402, %355 : vector<8x256xf32>
    %404 = arith.addf %401, %403 : vector<8x256xf32>
    %405 = vector.broadcast %47 : f32 to vector<8x256xf32>
    %406 = arith.mulf %405, %359 : vector<8x256xf32>
    %407 = arith.addf %404, %406 : vector<8x256xf32>
    %cst_66 = arith.constant 0.000000e+00 : f32
    %408 = vector.broadcast %cst_66 : f32 to vector<8x256xf32>
    %409 = arith.cmpf ogt, %407, %408 : vector<8x256xf32>
    %cst_67 = arith.constant 0.000000e+00 : f32
    %410 = vector.broadcast %cst_67 : f32 to vector<8x256xf32>
    %411 = arith.minimumf %407, %410 : vector<8x256xf32>
    %412 = math.exp %411 : vector<8x256xf32>
    %cst_68 = arith.constant 1.000000e+00 : f32
    %413 = vector.broadcast %cst_68 : f32 to vector<8x256xf32>
    %414 = arith.subf %412, %413 : vector<8x256xf32>
    %415 = arith.select %409, %407, %414 : vector<8x256xi1>, vector<8x256xf32>
    %cst_69 = arith.constant 0.000000e+00 : f32
    %416 = vector.broadcast %cst_69 : f32 to vector<8x256xf32>
    %417 = arith.select %81, %415, %416 : vector<8x256xi1>, vector<8x256xf32>
    %c1_i32_70 = arith.constant 1 : i32
    %418 = tpu.dynamic_rotate %388 by %c1_i32_70 dim 1 : vector<8x256xf32>, i32 -> vector<8x256xf32>
    %c255_i32_71 = arith.constant 255 : i32
    %419 = tpu.dynamic_rotate %388 by %c255_i32_71 dim 1 : vector<8x256xf32>, i32 -> vector<8x256xf32>
    %c1_i32_72 = arith.constant 1 : i32
    %420 = tpu.dynamic_rotate %417 by %c1_i32_72 dim 1 : vector<8x256xf32>, i32 -> vector<8x256xf32>
    %c255_i32_73 = arith.constant 255 : i32
    %421 = tpu.dynamic_rotate %417 by %c255_i32_73 dim 1 : vector<8x256xf32>, i32 -> vector<8x256xf32>
    %422 = vector.broadcast %48 : f32 to vector<8x256xf32>
    %423 = vector.broadcast %36 : f32 to vector<8x256xf32>
    %424 = arith.mulf %423, %418 : vector<8x256xf32>
    %425 = arith.addf %422, %424 : vector<8x256xf32>
    %426 = vector.broadcast %37 : f32 to vector<8x256xf32>
    %427 = arith.mulf %426, %388 : vector<8x256xf32>
    %428 = arith.addf %425, %427 : vector<8x256xf32>
    %429 = vector.broadcast %38 : f32 to vector<8x256xf32>
    %430 = arith.mulf %429, %419 : vector<8x256xf32>
    %431 = arith.addf %428, %430 : vector<8x256xf32>
    %432 = vector.broadcast %39 : f32 to vector<8x256xf32>
    %433 = arith.mulf %432, %420 : vector<8x256xf32>
    %434 = arith.addf %431, %433 : vector<8x256xf32>
    %435 = vector.broadcast %40 : f32 to vector<8x256xf32>
    %436 = arith.mulf %435, %417 : vector<8x256xf32>
    %437 = arith.addf %434, %436 : vector<8x256xf32>
    %438 = vector.broadcast %41 : f32 to vector<8x256xf32>
    %439 = arith.mulf %438, %421 : vector<8x256xf32>
    %440 = arith.addf %437, %439 : vector<8x256xf32>
    %cst_74 = arith.constant 0.000000e+00 : f32
    %441 = vector.broadcast %cst_74 : f32 to vector<8x256xf32>
    %442 = arith.cmpf ogt, %440, %441 : vector<8x256xf32>
    %cst_75 = arith.constant 0.000000e+00 : f32
    %443 = vector.broadcast %cst_75 : f32 to vector<8x256xf32>
    %444 = arith.minimumf %440, %443 : vector<8x256xf32>
    %445 = math.exp %444 : vector<8x256xf32>
    %cst_76 = arith.constant 1.000000e+00 : f32
    %446 = vector.broadcast %cst_76 : f32 to vector<8x256xf32>
    %447 = arith.subf %445, %446 : vector<8x256xf32>
    %448 = arith.select %442, %440, %447 : vector<8x256xi1>, vector<8x256xf32>
    %cst_77 = arith.constant 0.000000e+00 : f32
    %449 = vector.broadcast %cst_77 : f32 to vector<8x256xf32>
    %450 = arith.select %81, %448, %449 : vector<8x256xi1>, vector<8x256xf32>
    %451 = vector.broadcast %49 : f32 to vector<8x256xf32>
    %452 = vector.broadcast %42 : f32 to vector<8x256xf32>
    %453 = arith.mulf %452, %418 : vector<8x256xf32>
    %454 = arith.addf %451, %453 : vector<8x256xf32>
    %455 = vector.broadcast %43 : f32 to vector<8x256xf32>
    %456 = arith.mulf %455, %388 : vector<8x256xf32>
    %457 = arith.addf %454, %456 : vector<8x256xf32>
    %458 = vector.broadcast %44 : f32 to vector<8x256xf32>
    %459 = arith.mulf %458, %419 : vector<8x256xf32>
    %460 = arith.addf %457, %459 : vector<8x256xf32>
    %461 = vector.broadcast %45 : f32 to vector<8x256xf32>
    %462 = arith.mulf %461, %420 : vector<8x256xf32>
    %463 = arith.addf %460, %462 : vector<8x256xf32>
    %464 = vector.broadcast %46 : f32 to vector<8x256xf32>
    %465 = arith.mulf %464, %417 : vector<8x256xf32>
    %466 = arith.addf %463, %465 : vector<8x256xf32>
    %467 = vector.broadcast %47 : f32 to vector<8x256xf32>
    %468 = arith.mulf %467, %421 : vector<8x256xf32>
    %469 = arith.addf %466, %468 : vector<8x256xf32>
    %cst_78 = arith.constant 0.000000e+00 : f32
    %470 = vector.broadcast %cst_78 : f32 to vector<8x256xf32>
    %471 = arith.cmpf ogt, %469, %470 : vector<8x256xf32>
    %cst_79 = arith.constant 0.000000e+00 : f32
    %472 = vector.broadcast %cst_79 : f32 to vector<8x256xf32>
    %473 = arith.minimumf %469, %472 : vector<8x256xf32>
    %474 = math.exp %473 : vector<8x256xf32>
    %cst_80 = arith.constant 1.000000e+00 : f32
    %475 = vector.broadcast %cst_80 : f32 to vector<8x256xf32>
    %476 = arith.subf %474, %475 : vector<8x256xf32>
    %477 = arith.select %471, %469, %476 : vector<8x256xi1>, vector<8x256xf32>
    %cst_81 = arith.constant 0.000000e+00 : f32
    %478 = vector.broadcast %cst_81 : f32 to vector<8x256xf32>
    %479 = arith.select %81, %477, %478 : vector<8x256xi1>, vector<8x256xf32>
    %c1_i32_82 = arith.constant 1 : i32
    %480 = tpu.dynamic_rotate %450 by %c1_i32_82 dim 1 : vector<8x256xf32>, i32 -> vector<8x256xf32>
    %c255_i32_83 = arith.constant 255 : i32
    %481 = tpu.dynamic_rotate %450 by %c255_i32_83 dim 1 : vector<8x256xf32>, i32 -> vector<8x256xf32>
    %c1_i32_84 = arith.constant 1 : i32
    %482 = tpu.dynamic_rotate %479 by %c1_i32_84 dim 1 : vector<8x256xf32>, i32 -> vector<8x256xf32>
    %c255_i32_85 = arith.constant 255 : i32
    %483 = tpu.dynamic_rotate %479 by %c255_i32_85 dim 1 : vector<8x256xf32>, i32 -> vector<8x256xf32>
    %484 = vector.broadcast %62 : f32 to vector<8x256xf32>
    %485 = vector.broadcast %50 : f32 to vector<8x256xf32>
    %486 = arith.mulf %485, %480 : vector<8x256xf32>
    %487 = arith.addf %484, %486 : vector<8x256xf32>
    %488 = vector.broadcast %51 : f32 to vector<8x256xf32>
    %489 = arith.mulf %488, %450 : vector<8x256xf32>
    %490 = arith.addf %487, %489 : vector<8x256xf32>
    %491 = vector.broadcast %52 : f32 to vector<8x256xf32>
    %492 = arith.mulf %491, %481 : vector<8x256xf32>
    %493 = arith.addf %490, %492 : vector<8x256xf32>
    %494 = vector.broadcast %53 : f32 to vector<8x256xf32>
    %495 = arith.mulf %494, %482 : vector<8x256xf32>
    %496 = arith.addf %493, %495 : vector<8x256xf32>
    %497 = vector.broadcast %54 : f32 to vector<8x256xf32>
    %498 = arith.mulf %497, %479 : vector<8x256xf32>
    %499 = arith.addf %496, %498 : vector<8x256xf32>
    %500 = vector.broadcast %55 : f32 to vector<8x256xf32>
    %501 = arith.mulf %500, %483 : vector<8x256xf32>
    %502 = arith.addf %499, %501 : vector<8x256xf32>
    %cst_86 = arith.constant 0.000000e+00 : f32
    %503 = vector.broadcast %cst_86 : f32 to vector<8x256xf32>
    %504 = arith.cmpf ogt, %502, %503 : vector<8x256xf32>
    %cst_87 = arith.constant 0.000000e+00 : f32
    %505 = vector.broadcast %cst_87 : f32 to vector<8x256xf32>
    %506 = arith.minimumf %502, %505 : vector<8x256xf32>
    %507 = math.exp %506 : vector<8x256xf32>
    %cst_88 = arith.constant 1.000000e+00 : f32
    %508 = vector.broadcast %cst_88 : f32 to vector<8x256xf32>
    %509 = arith.subf %507, %508 : vector<8x256xf32>
    %510 = arith.select %504, %502, %509 : vector<8x256xi1>, vector<8x256xf32>
    %cst_89 = arith.constant 0.000000e+00 : f32
    %511 = vector.broadcast %cst_89 : f32 to vector<8x256xf32>
    %512 = arith.select %81, %510, %511 : vector<8x256xi1>, vector<8x256xf32>
    %513 = vector.broadcast %63 : f32 to vector<8x256xf32>
    %514 = vector.broadcast %56 : f32 to vector<8x256xf32>
    %515 = arith.mulf %514, %480 : vector<8x256xf32>
    %516 = arith.addf %513, %515 : vector<8x256xf32>
    %517 = vector.broadcast %57 : f32 to vector<8x256xf32>
    %518 = arith.mulf %517, %450 : vector<8x256xf32>
    %519 = arith.addf %516, %518 : vector<8x256xf32>
    %520 = vector.broadcast %58 : f32 to vector<8x256xf32>
    %521 = arith.mulf %520, %481 : vector<8x256xf32>
    %522 = arith.addf %519, %521 : vector<8x256xf32>
    %523 = vector.broadcast %59 : f32 to vector<8x256xf32>
    %524 = arith.mulf %523, %482 : vector<8x256xf32>
    %525 = arith.addf %522, %524 : vector<8x256xf32>
    %526 = vector.broadcast %60 : f32 to vector<8x256xf32>
    %527 = arith.mulf %526, %479 : vector<8x256xf32>
    %528 = arith.addf %525, %527 : vector<8x256xf32>
    %529 = vector.broadcast %61 : f32 to vector<8x256xf32>
    %530 = arith.mulf %529, %483 : vector<8x256xf32>
    %531 = arith.addf %528, %530 : vector<8x256xf32>
    %cst_90 = arith.constant 0.000000e+00 : f32
    %532 = vector.broadcast %cst_90 : f32 to vector<8x256xf32>
    %533 = arith.cmpf ogt, %531, %532 : vector<8x256xf32>
    %cst_91 = arith.constant 0.000000e+00 : f32
    %534 = vector.broadcast %cst_91 : f32 to vector<8x256xf32>
    %535 = arith.minimumf %531, %534 : vector<8x256xf32>
    %536 = math.exp %535 : vector<8x256xf32>
    %cst_92 = arith.constant 1.000000e+00 : f32
    %537 = vector.broadcast %cst_92 : f32 to vector<8x256xf32>
    %538 = arith.subf %536, %537 : vector<8x256xf32>
    %539 = arith.select %533, %531, %538 : vector<8x256xi1>, vector<8x256xf32>
    %cst_93 = arith.constant 0.000000e+00 : f32
    %540 = vector.broadcast %cst_93 : f32 to vector<8x256xf32>
    %541 = arith.select %81, %539, %540 : vector<8x256xi1>, vector<8x256xf32>
    %c1_i32_94 = arith.constant 1 : i32
    %542 = tpu.dynamic_rotate %512 by %c1_i32_94 dim 1 : vector<8x256xf32>, i32 -> vector<8x256xf32>
    %c255_i32_95 = arith.constant 255 : i32
    %543 = tpu.dynamic_rotate %512 by %c255_i32_95 dim 1 : vector<8x256xf32>, i32 -> vector<8x256xf32>
    %c1_i32_96 = arith.constant 1 : i32
    %544 = tpu.dynamic_rotate %541 by %c1_i32_96 dim 1 : vector<8x256xf32>, i32 -> vector<8x256xf32>
    %c255_i32_97 = arith.constant 255 : i32
    %545 = tpu.dynamic_rotate %541 by %c255_i32_97 dim 1 : vector<8x256xf32>, i32 -> vector<8x256xf32>
    %546 = vector.broadcast %62 : f32 to vector<8x256xf32>
    %547 = vector.broadcast %50 : f32 to vector<8x256xf32>
    %548 = arith.mulf %547, %542 : vector<8x256xf32>
    %549 = arith.addf %546, %548 : vector<8x256xf32>
    %550 = vector.broadcast %51 : f32 to vector<8x256xf32>
    %551 = arith.mulf %550, %512 : vector<8x256xf32>
    %552 = arith.addf %549, %551 : vector<8x256xf32>
    %553 = vector.broadcast %52 : f32 to vector<8x256xf32>
    %554 = arith.mulf %553, %543 : vector<8x256xf32>
    %555 = arith.addf %552, %554 : vector<8x256xf32>
    %556 = vector.broadcast %53 : f32 to vector<8x256xf32>
    %557 = arith.mulf %556, %544 : vector<8x256xf32>
    %558 = arith.addf %555, %557 : vector<8x256xf32>
    %559 = vector.broadcast %54 : f32 to vector<8x256xf32>
    %560 = arith.mulf %559, %541 : vector<8x256xf32>
    %561 = arith.addf %558, %560 : vector<8x256xf32>
    %562 = vector.broadcast %55 : f32 to vector<8x256xf32>
    %563 = arith.mulf %562, %545 : vector<8x256xf32>
    %564 = arith.addf %561, %563 : vector<8x256xf32>
    %cst_98 = arith.constant 0.000000e+00 : f32
    %565 = vector.broadcast %cst_98 : f32 to vector<8x256xf32>
    %566 = arith.cmpf ogt, %564, %565 : vector<8x256xf32>
    %cst_99 = arith.constant 0.000000e+00 : f32
    %567 = vector.broadcast %cst_99 : f32 to vector<8x256xf32>
    %568 = arith.minimumf %564, %567 : vector<8x256xf32>
    %569 = math.exp %568 : vector<8x256xf32>
    %cst_100 = arith.constant 1.000000e+00 : f32
    %570 = vector.broadcast %cst_100 : f32 to vector<8x256xf32>
    %571 = arith.subf %569, %570 : vector<8x256xf32>
    %572 = arith.select %566, %564, %571 : vector<8x256xi1>, vector<8x256xf32>
    %cst_101 = arith.constant 0.000000e+00 : f32
    %573 = vector.broadcast %cst_101 : f32 to vector<8x256xf32>
    %574 = arith.select %81, %572, %573 : vector<8x256xi1>, vector<8x256xf32>
    %575 = vector.broadcast %63 : f32 to vector<8x256xf32>
    %576 = vector.broadcast %56 : f32 to vector<8x256xf32>
    %577 = arith.mulf %576, %542 : vector<8x256xf32>
    %578 = arith.addf %575, %577 : vector<8x256xf32>
    %579 = vector.broadcast %57 : f32 to vector<8x256xf32>
    %580 = arith.mulf %579, %512 : vector<8x256xf32>
    %581 = arith.addf %578, %580 : vector<8x256xf32>
    %582 = vector.broadcast %58 : f32 to vector<8x256xf32>
    %583 = arith.mulf %582, %543 : vector<8x256xf32>
    %584 = arith.addf %581, %583 : vector<8x256xf32>
    %585 = vector.broadcast %59 : f32 to vector<8x256xf32>
    %586 = arith.mulf %585, %544 : vector<8x256xf32>
    %587 = arith.addf %584, %586 : vector<8x256xf32>
    %588 = vector.broadcast %60 : f32 to vector<8x256xf32>
    %589 = arith.mulf %588, %541 : vector<8x256xf32>
    %590 = arith.addf %587, %589 : vector<8x256xf32>
    %591 = vector.broadcast %61 : f32 to vector<8x256xf32>
    %592 = arith.mulf %591, %545 : vector<8x256xf32>
    %593 = arith.addf %590, %592 : vector<8x256xf32>
    %cst_102 = arith.constant 0.000000e+00 : f32
    %594 = vector.broadcast %cst_102 : f32 to vector<8x256xf32>
    %595 = arith.cmpf ogt, %593, %594 : vector<8x256xf32>
    %cst_103 = arith.constant 0.000000e+00 : f32
    %596 = vector.broadcast %cst_103 : f32 to vector<8x256xf32>
    %597 = arith.minimumf %593, %596 : vector<8x256xf32>
    %598 = math.exp %597 : vector<8x256xf32>
    %cst_104 = arith.constant 1.000000e+00 : f32
    %599 = vector.broadcast %cst_104 : f32 to vector<8x256xf32>
    %600 = arith.subf %598, %599 : vector<8x256xf32>
    %601 = arith.select %595, %593, %600 : vector<8x256xi1>, vector<8x256xf32>
    %cst_105 = arith.constant 0.000000e+00 : f32
    %602 = vector.broadcast %cst_105 : f32 to vector<8x256xf32>
    %603 = arith.select %81, %601, %602 : vector<8x256xi1>, vector<8x256xf32>
    %c1_i32_106 = arith.constant 1 : i32
    %604 = tpu.dynamic_rotate %574 by %c1_i32_106 dim 1 : vector<8x256xf32>, i32 -> vector<8x256xf32>
    %c255_i32_107 = arith.constant 255 : i32
    %605 = tpu.dynamic_rotate %574 by %c255_i32_107 dim 1 : vector<8x256xf32>, i32 -> vector<8x256xf32>
    %c1_i32_108 = arith.constant 1 : i32
    %606 = tpu.dynamic_rotate %603 by %c1_i32_108 dim 1 : vector<8x256xf32>, i32 -> vector<8x256xf32>
    %c255_i32_109 = arith.constant 255 : i32
    %607 = tpu.dynamic_rotate %603 by %c255_i32_109 dim 1 : vector<8x256xf32>, i32 -> vector<8x256xf32>
    %608 = vector.broadcast %70 : f32 to vector<8x256xf32>
    %609 = vector.broadcast %64 : f32 to vector<8x256xf32>
    %610 = arith.mulf %609, %604 : vector<8x256xf32>
    %611 = arith.addf %608, %610 : vector<8x256xf32>
    %612 = vector.broadcast %65 : f32 to vector<8x256xf32>
    %613 = arith.mulf %612, %574 : vector<8x256xf32>
    %614 = arith.addf %611, %613 : vector<8x256xf32>
    %615 = vector.broadcast %66 : f32 to vector<8x256xf32>
    %616 = arith.mulf %615, %605 : vector<8x256xf32>
    %617 = arith.addf %614, %616 : vector<8x256xf32>
    %618 = vector.broadcast %67 : f32 to vector<8x256xf32>
    %619 = arith.mulf %618, %606 : vector<8x256xf32>
    %620 = arith.addf %617, %619 : vector<8x256xf32>
    %621 = vector.broadcast %68 : f32 to vector<8x256xf32>
    %622 = arith.mulf %621, %603 : vector<8x256xf32>
    %623 = arith.addf %620, %622 : vector<8x256xf32>
    %624 = vector.broadcast %69 : f32 to vector<8x256xf32>
    %625 = arith.mulf %624, %607 : vector<8x256xf32>
    %626 = arith.addf %623, %625 : vector<8x256xf32>
    %cst_110 = arith.constant 0.000000e+00 : f32
    %627 = vector.broadcast %cst_110 : f32 to vector<8x256xf32>
    %628 = arith.select %81, %626, %627 : vector<8x256xi1>, vector<8x256xf32>
    %c0_111 = arith.constant 0 : index
    %c0_112 = arith.constant 0 : index
    %629 = vector.load %arg4[%c0_111, %c0_112] : memref<8x256xf32, #tpu.memory_space<vmem>>, vector<8x256xf32>
    tpu.vector_store %arg4[%c0_111, %c0_112], %628 {strides = array<i32>} : memref<8x256xf32, #tpu.memory_space<vmem>>, vector<8x256xf32>,
    %c0_113 = arith.constant 0 : index
    %c64_114 = arith.constant 64 : index
    %630 = vector.load %arg4[%c0_113, %c64_114] : memref<8x256xf32, #tpu.memory_space<vmem>>, vector<8x128xf32>
    %c0_115 = arith.constant 0 : index
    %c0_116 = arith.constant 0 : index
    %631 = vector.load %arg3[%c0_115, %c0_116] : memref<8x128xf32, #tpu.memory_space<vmem>>, vector<8x128xf32>
    tpu.vector_store %arg3[%c0_115, %c0_116], %630 {strides = array<i32>} : memref<8x128xf32, #tpu.memory_space<vmem>>, vector<8x128xf32>,
    return
  }
  func.func @transform_0(%arg0: i32) -> i32 {
    %c0_i32 = arith.constant 0 : i32
    %c0_i32_0 = arith.constant 0 : i32
    return %c0_i32 : i32
  }
  func.func @transform_1(%arg0: i32) -> (i32, i32) {
    %c0_i32 = arith.constant 0 : i32
    %c0_i32_0 = arith.constant 0 : i32
    return %arg0, %c0_i32 : i32, i32
  }
  func.func @transform_2(%arg0: i32) -> (i32, i32) {
    %c0_i32 = arith.constant 0 : i32
    %c0_i32_0 = arith.constant 0 : i32
    return %arg0, %c0_i32 : i32, i32
  }
}

</mosaic_0001>

<bundles_post_ra>
// kernel: tpu_custom_call.1
= control target key start
LH: loop header
LB: loop body
LE: loop exit
PB: predicated region body
PF: predicated region fallthrough
CT: control target
= control target key end

     0   :  { %7 = vsyncpa [#allocation6], 0  ;;  %s2599_s0 = inlined_call_operand.hbm [shape: f32[71], index: 0, kind: input, shape index: {}]   ;;  %s2600_s1 = inlined_call_operand.hbm [shape: f32[16,128], index: 1, kind: input, shape index: {}]   ;;  %s2601_s2 = inlined_call_operand.hbm [shape: f32[16,128], index: 2, kind: output, shape index: {}]  }
   0x1   :  { %8 = vsyncpa [#allocation4], 0 }
   0x2   :  { %10 = vsyncpa [#allocation4 + $0x1], 0 }
   0x3   :  { %11 = vsyncpa [#allocation5], 0 }
   0x4   :  { %13 = vsyncpa [#allocation5 + $0x1], 0  ;;  %s1708_s9 = smov 0   ;;  %s1710_s10 = smov 0  }
   0x5   :  { %s1712_s11 = smov 0   ;;  %s1714_s12 = smov 0  }
   0x6 LB: > { %s1729_s13 = sadd.s32 4294967295, %s1684_s12   ;;  %s1336_s14 = sadd.s32 4294967294, %s1684_s12   ;;  %s1684_s12 = sphi %s1714_s12, %s2621_s12   ;;  %s1680_s11 = sphi %s1712_s11, %s2620_s11   ;;  %s1676_s10 = sphi %s1710_s10, %s2619_s10   ;;  %s1672_s9 = sphi %s1708_s9, %s2618_s9  }
   0x7   : > { %p60_p0 = scmp.ne.s32.totalorder %s1676_s10, %s1672_s9  ;;  %p2602_p1 = scmp.eq.s32.totalorder %s1729_s13, 0 }
   0x8   : > { %p84_p2 = scmp.eq.s32.totalorder %s1729_s13, 1  ;;  %p90_p3 = scmp.eq.s32.totalorder %s1336_s14, 1 }
   0x9   : > { %p1738_p4 = por %p2602_p1, %p60_p0  ;;  %p1337_p5 = scmp.ge.s32.totalorder %s1684_s12, 1 }
   0xa   : > { %p1743_p6 = por %p90_p3, %p60_p0  ;;  %p97_p7 = scmp.lt.s32.totalorder %s1684_s12, 3 }
   0xb   : > { %s2606_s15 = scalar_select %p1738_p4, 1, 0 }
   0xc   : > { %s2607_s16 = scalar_select %p1743_p6, 1, 0 }
   0xd   : > { %p1748_p8 = pnand %p1337_p5, %p97_p7  ;;  %s1754_s18 = sadd.s32 1, %s1684_s12  }
   0xe   : > { %s44_s19 = ssub.s32 %s1684_s12, %s1754_s18  ;;  %s47_s20 = sadd.s32 1, %s1680_s11 }
   0xf   : > { %s2608_s17 = scalar_select %p1748_p8, 1, 0 }
  0x10   : > { %p1460_p10 = pneg %p1748_p8  ;;  %p45_p12 = scmp.eq.s32.totalorder %s44_s19, 0 }
  0x11   : > { %p54_p13 = scmp.ne.s32.totalorder %s1680_s11, %s1676_s10  ;;  %p55_p0 = scmp.eq.s32.totalorder %s1684_s12, 0 }
  0x12   : > { %p1461_p11 = pnand %p1460_p10, %p2602_p1  ;;  %p1473_p3 = scmp.lt.s32.totalorder %s1684_s12, 2 }
  0x13   : > { %s1686_s21 = smov [#allocation3]   ;;  %p56_p5 = por %p55_p0, %p54_p13 }
  0x14   : > { %1463 = dma.hbm_to_smem (!%p1461_p11), %s2599_s0, 16, %s1686_s21, [#allocation6]  }
  0x15   : > { %s1771_s24 = scalar_select %p45_p12, %s1680_s11, %s47_s20  }
  0x16   : > { %p1775_p7 = por %p84_p2, %p54_p13  ;;  %s119_s26 = sand.u32 1, %s1680_s11  }
  0x17   : > { %s1341_s27 = sshll.u32 %s1684_s12, 7  ;;  %s1340_s28 = sshll.u32 %s119_s26, 3 }
  0x18   : > { %s2609_s25 = scalar_select %p1775_p7, 1, 0 }
  0x19   : > { %s1784_s3 = scalar_lea.hbm %s2600_s1, %s1341_s27  ;;  %s123_s4 = scalar_lea.vmem [#allocation7], %s1340_s28 }
  0x1a   : > { %s130_s5 = sshll.u32 %s123_s4, 4  ;;  %p1786_p10 = pnand %p1473_p3, %p56_p5  ;;  %s131_s5 = int_to_ptr.vmem [resolvable:$true] %s130_s5 }
  0x1b   : > { %s120_s7 = scalar_lea.sflag [#allocation4], %s119_s26  ;;  %s1588_s8 = scalar_lea.hbm %s1784_s3, 128 }
  0x1c   : > { %p1589_p2 = scmp.ne.s32.totalorder %s1784_s3, %s1588_s8  ;;  %p1590_p11 = pneg %p1786_p10 }
  0x1d   : > { %s1593_s20 = scalar_lea.hbm %s2600_s1, 256  ;;  %p1594_p0 = scmp.lt.s32.totalorder %s1784_s3, %s2600_s1 }
  0x1e   : > { %p1591_p12 = pnand %p1590_p11, %p1589_p2  ;;  %p1595_p3 = scmp.lt.s32.totalorder %s1593_s20, %s1588_s8 }
  0x20   : > { %p1592_p13 = pneg %p1591_p12  ;;  %p1596_p5 = por %p1595_p3, %p1594_p0 }
  0x22   : > { %p1597_p9 = pnand %p1596_p5, %p1592_p13 }
  0x24   : > { %1600 = shalt.err (!%p1597_p9)
}
  0x25   : > { %s1601_s23 = scalar_lea.vmem %s131_s5, 128  ;;  %s1687_s26 = smov [#allocation7]  }
  0x26   : > { %p1602_p1 = scmp.ne.s32.totalorder %s131_s5, %s1601_s23  ;;  %s1606_s27 = sshll.u32 %s1687_s26, 4  ;;  %s1607_s27 = int_to_ptr.vmem [resolvable:$false] %s1606_s27 }
  0x27   : > { %s1608_s28 = scalar_lea.vmem %s1607_s27, 256  ;;  %p1609_p2 = scmp.lt.s32.totalorder %s131_s5, %s1607_s27 }
  0x28   : > { %p1604_p6 = pnand %p1602_p1, %p1590_p11  ;;  %p1610_p12 = scmp.lt.s32.totalorder %s1608_s28, %s1601_s23 }
  0x2a   : > { %p1605_p7 = pneg %p1604_p6  ;;  %p1611_p4 = por %p1610_p12, %p1609_p2 }
  0x2c   : > { %p1612_p8 = pnand %p1611_p4, %p1605_p7 }
  0x2e   : > { %1615 = shalt.err (!%p1612_p8)
}
  0x2f   : > { %1467 = dma.hbm_to_vmem [thread:$0]  (!%p1786_p10), %s1784_s3, 128, %s131_s5, %s120_s7  }
  0x30   : > { %p2611_p13 = scmp.ne.s32.totalorder %s2608_s17, 0 }
  0x31   : > { %p2612_p9 = scmp.eq.s32.totalorder (!%p2611_p13), %s1729_s13, 0 }
  0x32   : > { %139 = sbr.rel (%p2611_p13) target bundleno = 1814 (0x716), region = 28 }
  0x37   : > { %1659 = dma.done.wait (%p2612_p9), [#allocation6], 16   ;;  %p2613_p1 = pmov %p2612_p9 }
  0x38   : > { %s1811_s29 = sand.u32 1, %s1676_s10   ;;  %p2614_p4 = scmp.ne.s32.totalorder %s2606_s15, 0 }
  0x39   : > { %1661 = vsyncadd (%p2613_p1), [#allocation6], 4294967280  ;;  %s1344_s30 = sshll.u32 %s1811_s29, 3  ;;  %s146_s4 = scalar_lea.sflag [#allocation4], %s1811_s29 }
  0x3a   : > { %s149_s3 = scalar_lea.vmem [#allocation7], %s1344_s30 }
  0x3b   : > { %1663 = dma.done.wait (%p2614_p4), %s146_s4, 128  }
  0x3c   : > { %1665 = vsyncadd (%p2614_p4), %s146_s4, 4294967168 }
  0x3d   : > { %154 = sfence }
  0x3e   : > { %v244_v0 = vld [vmem:[%s149_s3] sm:$0xff]  ;;  %s1688_s17 = smov 64   ;;  %v1689_v1 = vmov 0.0   ;;  %vm249_vm0 = vcmask 1048064   ;;  %vm251_vm1 = vcmask 523264   ;;  %s1690_s5 = smov 1   ;;  %v255_v5 = vlaneseq }
  0x3f   : > { %246 = vrot.lane.b32.xlu0 %v244_v0, %s1688_s17  ;;  %242 = vst [vmem:[#allocation2] sm:$0xff] %v1689_v1  ;;  %243 = vst [vmem:[#allocation2 + $0x8] sm:$0xff] %v1689_v1  ;;  %s1691_s15 = smov 127   ;;  %s1827_s6 = sld [smem:[#allocation3 + $0x1]] }
  0x40   : > { %s1829_s7 = sld [smem:[#allocation3 + $0x4]]  ;;  %v1831_v6 = vand.u32 127, %v255_v5  ;;  %p2615_p8 = scmp.ne.s32.totalorder %s2609_s25, 0 }
  0x41   : > { %s171_s8 = sld [smem:[#allocation3]] }
  0x42   : > { %s1348_s14 = sld [smem:[#allocation3 + $0x3]]  ;;  %vm268_vm2 = vcmp.lt.s32.totalorder %v1831_v6, 1  ;;  %vm275_vm3 = vcmp.lt.s32.totalorder %v1831_v6, 127  ;;  %v1848_v23 = vadd.s32 128, %v1831_v6  ;;  %vm258_vm5 = vcmp.ge.s32.totalorder %v1831_v6, 61 }
  0x43   : > { %s1351_s19 = sld [smem:[#allocation3 + $0x6]] }
  0x44   : > { %s1352_s20 = sld [smem:[#allocation3 + $0x7]]  ;;  %vm261_vm4 = vcmp.lt.s32.totalorder %v1848_v23, 195 }
  0x45   : > { %s1833_s21 = sld [smem:[#allocation3 + $0x2]]  ;;  %v284_v12 = vstv %s1827_s6 }
  0x46   : > { %s1835_s22 = sld [smem:[#allocation3 + $0x5]]  ;;  %v302_v21 = vstv %s1829_s7 }
  0x47   : > { %v279_v7 = vstv %s171_s8  ;;  %s1354_s23 = sld [smem:[#allocation3 + $0x9]] }
  0x48   : > { %v297_v8 = vstv %s1348_s14  ;;  %s1360_s26 = sld [smem:[#allocation3 + $0xf]] }
  0x49   : > { %v278_v11 = vstv %s1351_s19  ;;  %s1357_s27 = sld [smem:[#allocation3 + $0xc]] }
  0x4a   : > { %v296_v15 = vstv %s1352_s20  ;;  %s1363_s28 = sld [smem:[#allocation3 + $0x12]] }
  0x4b   : > { %v289_v20 = vstv %s1833_s21  ;;  %s1353_s4 = sld [smem:[#allocation3 + $0x8]] }
  0x4c   : > { %v307_v22 = vstv %s1835_s22  ;;  %s1359_s3 = sld [smem:[#allocation3 + $0xe]] }
  0x4d   : > { %s1365_s6 = sld [smem:[#allocation3 + $0x14]]  ;;  %v1878_v52 = vstv %s1354_s23 }
  0x4e   : > { %s1366_s7 = sld [smem:[#allocation3 + $0x15]]  ;;  %v1880_v53 = vstv %s1360_s26 }
  0x4f   : > { %s1355_s8 = sld [smem:[#allocation3 + $0xa]]  ;;  %v1886_v56 = vstv %s1357_s27 }
  0x50   : > { %s1361_s14 = sld [smem:[#allocation3 + $0x10]]  ;;  %v1888_v57 = vstv %s1363_s28 }
  0x51   : > { %s1356_s19 = sld [smem:[#allocation3 + $0xb]]  ;;  %v1882_v54 = vstv %s1353_s4 }
  0x52   : > { %s1876_s20 = sld [smem:[#allocation3 + $0x11]]  ;;  %v1884_v55 = vstv %s1359_s3 }
  0x53   : > { %v1890_v59 = vstv %s1365_s6  ;;  %s1902_s21 = sld [smem:[#allocation3 + $0xd]] }
  0x54   : > { %v1892_v60 = vstv %s1366_s7  ;;  %s1917_s22 = sld [smem:[#allocation3 + $0x13]] }
  0x55   : > { %v1898_v0 = vstv %s1355_s8  ;;  %s1368_s23 = sld [smem:[#allocation3 + $0x17]] }
  0x56   : > { %v1900_v1 = vstv %s1361_s14  ;;  %s1374_s26 = sld [smem:[#allocation3 + $0x1d]] }
  0x57   : > { %s1371_s27 = sld [smem:[#allocation3 + $0x1a]] }
  0x58   : > { %s1377_s28 = sld [smem:[#allocation3 + $0x20]] }
  0x59   : > { %s1367_s4 = sld [smem:[#allocation3 + $0x16]] }
  0x5a   : > { %s1373_s3 = sld [smem:[#allocation3 + $0x1c]] }
  0x5b   : > { %s1379_s6 = sld [smem:[#allocation3 + $0x22]] }
  0x5c   : > { %s1380_s7 = sld [smem:[#allocation3 + $0x23]] }
  0x5d   : > { %s1369_s8 = sld [smem:[#allocation3 + $0x18]] }
  0x5e   : > { %s1375_s14 = sld [smem:[#allocation3 + $0x1e]] }
  0xb1   : > { %v247_v2 = vpop.permute.xlu0 %246 }
  0xb2   : > { %250 = vst.msk [vmem:[#allocation2] sm:$0xff] %vm249_vm0, %v247_v2 }
  0xb3   : > { %252 = vst.msk [vmem:[#allocation2 + $0x8] sm:$0xff] %vm251_vm1, %v247_v2 }
  0xb9   : > { %v253_v4 = vld [vmem:[#allocation2] sm:$0xff] }
  0xba   : > { %v254_v3 = vld [vmem:[#allocation2 + $0x8] sm:$0xff]  ;;  %264 = vrot.lane.b32.xlu0 %v253_v4, %s1690_s5  ;;  %v285_v28 = vmul.f32 %v284_v12, %v253_v4  ;;  %v303_v38 = vmul.f32 %v302_v21, %v253_v4 }
  0xbb   : > { %266 = vrot.lane.b32.xlu1 %v254_v3, %s1690_s5  ;;  %v286_v29 = vmul.f32 %v284_v12, %v254_v3  ;;  %v304_v39 = vmul.f32 %v302_v21, %v254_v3 }
  0xbe   : > { %273 = vrot.lane.b32.xlu0 %v254_v3, %s1691_s15 }
  0xbf   : > { %271 = vrot.lane.b32.xlu1 %v253_v4, %s1691_s15 }
 0x12c   : > { %v265_v10 = vpop.permute.xlu0 %264 }
 0x12d   : > { %v267_v9 = vpop.permute.xlu1 %266 }
 0x12e   : > { %v269_v13 = vsel %vm268_vm2, %v265_v10, %v267_v9  ;;  %v270_v14 = vsel %vm268_vm2, %v267_v9, %v265_v10  ;;  %v1911_v10 = vstv %s1356_s19  ;;  %s1370_s19 = sld [smem:[#allocation3 + $0x19]] }
 0x12f   : > { %v280_v16 = vmul.f32 %v279_v7, %v270_v14  ;;  %v281_v17 = vmul.f32 %v279_v7, %v269_v13  ;;  %v298_v18 = vmul.f32 %v297_v8, %v270_v14  ;;  %v299_v19 = vmul.f32 %v297_v8, %v269_v13 }
 0x130   : > { %v274_v27 = vpop.permute.xlu0 %273 }
 0x131   : > { %v282_v24 = vadd.f32 %v280_v16, %v278_v11  ;;  %v283_v25 = vadd.f32 %v281_v17, %v278_v11  ;;  %v272_v26 = vpop.permute.xlu1 %271  ;;  %v300_v30 = vadd.f32 %v298_v18, %v296_v15  ;;  %v301_v31 = vadd.f32 %v299_v19, %v296_v15 }
 0x132   : > { %v276_v32 = vsel %vm275_vm3, %v272_v26, %v274_v27  ;;  %v277_v33 = vsel %vm275_vm3, %v274_v27, %v272_v26 }
 0x133   : > { %v287_v34 = vadd.f32 %v285_v28, %v282_v24  ;;  %v288_v35 = vadd.f32 %v286_v29, %v283_v25  ;;  %v290_v36 = vmul.f32 %v289_v20, %v276_v32  ;;  %v291_v37 = vmul.f32 %v289_v20, %v277_v33 }
 0x134   : > { %v305_v42 = vadd.f32 %v303_v38, %v300_v30  ;;  %v306_v43 = vadd.f32 %v304_v39, %v301_v31  ;;  %v308_v44 = vmul.f32 %v307_v22, %v276_v32  ;;  %v309_v45 = vmul.f32 %v307_v22, %v277_v33 }
 0x135   : > { %v292_v40 = vadd.f32 %v290_v36, %v287_v34  ;;  %v293_v41 = vadd.f32 %v291_v37, %v288_v35  ;;  %v1925_v20 = vstv %s1876_s20  ;;  %v1938_v37 = vstv %s1902_s21  ;;  %s2039_s20 = sld [smem:[#allocation3 + $0x1f]] }
 0x136   : > { %v310_v48 = vadd.f32 %v308_v44, %v305_v42  ;;  %v311_v49 = vadd.f32 %v309_v45, %v306_v43  ;;  %s2065_s21 = sld [smem:[#allocation3 + $0x1b]] }
 0x137   : > { %v295_v46 = vsel %vm261_vm4, %v293_v41, 0.0  ;;  %v294_v47 = vsel %vm258_vm5, %v292_v40, 0.0 }
 0x138   : > { %316 = vrot.lane.b32.xlu0 %v295_v46, %s1690_s5  ;;  %314 = vrot.lane.b32.xlu1 %v294_v47, %s1690_s5  ;;  %v313_v50 = vsel %vm261_vm4, %v311_v49, 0.0  ;;  %v1868_v51 = vsel %vm258_vm5, %v310_v48, 0.0  ;;  %v346_v7 = vmul.f32 %v1878_v52, %v295_v46  ;;  %v391_v8 = vmul.f32 %v1880_v53, %v295_v46 }
 0x139   : > { %v345_v9 = vmul.f32 %v1878_v52, %v294_v47  ;;  %v390_v17 = vmul.f32 %v1880_v53, %v294_v47  ;;  %v361_v30 = vmul.f32 %v1886_v56, %v313_v50  ;;  %v406_v31 = vmul.f32 %v1888_v57, %v313_v50 }
 0x13a   : > { %v360_v34 = vmul.f32 %v1886_v56, %v1868_v51 }
 0x13c   : > { %322 = vrot.lane.b32.xlu0 %v295_v46, %s1691_s15  ;;  %320 = vrot.lane.b32.xlu1 %v294_v47, %s1691_s15  ;;  %v405_v46 = vmul.f32 %v1888_v57, %v1868_v51 }
 0x140   : > { %328 = vrot.lane.b32.xlu0 %v313_v50, %s1690_s5  ;;  %326 = vrot.lane.b32.xlu1 %v1868_v51, %s1690_s5 }
 0x144   : > { %334 = vrot.lane.b32.xlu0 %v313_v50, %s1691_s15  ;;  %332 = vrot.lane.b32.xlu1 %v1868_v51, %s1691_s15  ;;  %v1949_v50 = vstv %s1917_s22  ;;  %s2080_s22 = sld [smem:[#allocation3 + $0x21]] }
 0x1aa   : > { %v317_v58 = vpop.permute.xlu0 %316  ;;  %v315_v61 = vpop.permute.xlu1 %314 }
 0x1ab   : > { %v318_v62 = vsel %vm268_vm2, %v315_v61, %v317_v58  ;;  %v319_v63 = vsel %vm268_vm2, %v317_v58, %v315_v61 }
 0x1ac   : > { %v340_v2 = vmul.f32 %v1882_v54, %v319_v63  ;;  %v341_v3 = vmul.f32 %v1882_v54, %v318_v62  ;;  %v385_v4 = vmul.f32 %v1884_v55, %v319_v63  ;;  %v386_v5 = vmul.f32 %v1884_v55, %v318_v62 }
 0x1ae   : > { %v342_v11 = vadd.f32 %v340_v2, %v1890_v59  ;;  %v343_v12 = vadd.f32 %v341_v3, %v1890_v59  ;;  %v387_v13 = vadd.f32 %v385_v4, %v1892_v60  ;;  %v388_v14 = vadd.f32 %v386_v5, %v1892_v60  ;;  %v323_v15 = vpop.permute.xlu0 %322  ;;  %v321_v16 = vpop.permute.xlu1 %320 }
 0x1af   : > { %v324_v18 = vsel %vm275_vm3, %v321_v16, %v323_v15  ;;  %v325_v19 = vsel %vm275_vm3, %v323_v15, %v321_v16 }
 0x1b0   : > { %v348_v21 = vadd.f32 %v346_v7, %v343_v12  ;;  %v393_v22 = vadd.f32 %v391_v8, %v388_v14  ;;  %v347_v24 = vadd.f32 %v345_v9, %v342_v11  ;;  %v350_v25 = vmul.f32 %v1898_v0, %v324_v18 }
 0x1b1   : > { %v351_v26 = vmul.f32 %v1898_v0, %v325_v19  ;;  %v392_v27 = vadd.f32 %v390_v17, %v387_v13  ;;  %v395_v28 = vmul.f32 %v1900_v1, %v324_v18  ;;  %v396_v29 = vmul.f32 %v1900_v1, %v325_v19 }
 0x1b2   : > { %v329_v32 = vpop.permute.xlu0 %328  ;;  %v327_v33 = vpop.permute.xlu1 %326  ;;  %v352_v42 = vadd.f32 %v350_v25, %v347_v24 }
 0x1b3   : > { %v353_v35 = vadd.f32 %v351_v26, %v348_v21  ;;  %v330_v36 = vsel %vm268_vm2, %v327_v33, %v329_v32  ;;  %v398_v38 = vadd.f32 %v396_v29, %v393_v22  ;;  %v331_v39 = vsel %vm268_vm2, %v329_v32, %v327_v33 }
 0x1b4   : > { %v356_v40 = vmul.f32 %v1911_v10, %v330_v36  ;;  %v401_v41 = vmul.f32 %v1925_v20, %v330_v36  ;;  %v397_v43 = vadd.f32 %v395_v28, %v392_v27  ;;  %v355_v44 = vmul.f32 %v1911_v10, %v331_v39 }
 0x1b5   : > { %v400_v45 = vmul.f32 %v1925_v20, %v331_v39 }
 0x1b6   : > { %v358_v47 = vadd.f32 %v356_v40, %v353_v35  ;;  %v403_v48 = vadd.f32 %v401_v41, %v398_v38  ;;  %v335_v49 = vpop.permute.xlu0 %334  ;;  %v333_v58 = vpop.permute.xlu1 %332  ;;  %v357_v61 = vadd.f32 %v355_v44, %v352_v42 }
 0x1b7   : > { %v402_v62 = vadd.f32 %v400_v45, %v397_v43  ;;  %v336_v63 = vsel %vm275_vm3, %v333_v58, %v335_v49  ;;  %v337_v2 = vsel %vm275_vm3, %v335_v49, %v333_v58 }
 0x1b8   : > { %v363_v3 = vadd.f32 %v361_v30, %v358_v47  ;;  %v408_v4 = vadd.f32 %v406_v31, %v403_v48  ;;  %v365_v5 = vmul.f32 %v1938_v37, %v336_v63  ;;  %v366_v51 = vmul.f32 %v1938_v37, %v337_v2 }
 0x1b9   : > { %v362_v7 = vadd.f32 %v360_v34, %v357_v61  ;;  %v407_v8 = vadd.f32 %v405_v46, %v402_v62  ;;  %v410_v9 = vmul.f32 %v1949_v50, %v336_v63  ;;  %v411_v11 = vmul.f32 %v1949_v50, %v337_v2 }
 0x1ba   : > { %v368_v12 = vadd.f32 %v366_v51, %v363_v3 }
 0x1bb   : > { %v367_v13 = vadd.f32 %v365_v5, %v362_v7  ;;  %v412_v14 = vadd.f32 %v410_v9, %v407_v8  ;;  %v413_v15 = vadd.f32 %v411_v11, %v408_v4 }
 0x1bc   : > { %v372_v16 = vmin.f32 %v368_v12, 0.0  ;;  %vm370_vm6 = vcmp.gt.f32.partialorder %v368_v12, 0.0 }
 0x1bd   : > { %v371_v17 = vmin.f32 %v367_v13, 0.0  ;;  %v416_v18 = vmin.f32 %v412_v14, 0.0  ;;  %v417_v19 = vmin.f32 %v413_v15, 0.0  ;;  %vm369_vm7 = vcmp.gt.f32.partialorder %v367_v13, 0.0 }
 0x1be   : > { %v375_v21 = vmul.f32 1.442695, %v372_v16  ;;  %vm415_vm8 = vcmp.gt.f32.partialorder %v413_v15, 0.0  ;;  %vm414_vm9 = vcmp.gt.f32.partialorder %v412_v14, 0.0 }
 0x1bf   : > { %v373_v22 = vmul.f32 1.442695, %v371_v17  ;;  %v418_v24 = vmul.f32 1.442695, %v416_v18  ;;  %v420_v25 = vmul.f32 1.442695, %v417_v19 }
 0x1c0   : > { %1513 = vpow2.f32 %v375_v21 }
 0x1c1   : > { %1515 = vpow2.f32 %v373_v22 }
 0x1c2   : > { %1517 = vpow2.f32 %v418_v24 }
 0x1c3   : > { %1519 = vpow2.f32 %v420_v25 }
 0x1cd   : > { %v1514_v26 = vpop.eup %1513 }
 0x1ce   : > { %v1516_v27 = vpop.eup %1515  ;;  %v1417_v28 = vadd.f32 -1.0, %v1514_v26 }
 0x1cf   : > { %v1518_v29 = vpop.eup %1517  ;;  %v1416_v30 = vadd.f32 -1.0, %v1516_v27 }
 0x1d0   : > { %v1520_v31 = vpop.eup %1519  ;;  %v380_v32 = vsel %vm370_vm6, %v368_v12, %v1417_v28  ;;  %v1418_v38 = vadd.f32 -1.0, %v1518_v29 }
 0x1d1   : > { %v382_v33 = vsel %vm261_vm4, %v380_v32, 0.0  ;;  %v379_v34 = vsel %vm369_vm7, %v367_v13, %v1416_v30  ;;  %v1419_v36 = vadd.f32 -1.0, %v1520_v31 }
 0x1d2   : > { %430 = vrot.lane.b32.xlu0 %v382_v33, %s1690_s5  ;;  %v381_v35 = vsel %vm258_vm5, %v379_v34, 0.0  ;;  %v424_v40 = vsel %vm414_vm9, %v412_v14, %v1418_v38  ;;  %v457_v61 = vmul.f32 %v382_v33, %v1878_v52  ;;  %v495_v62 = vmul.f32 %v1880_v53, %v382_v33 }
 0x1d3   : > { %428 = vrot.lane.b32.xlu1 %v381_v35, %s1690_s5  ;;  %v425_v39 = vsel %vm415_vm8, %v413_v15, %v1419_v36  ;;  %v426_v42 = vsel %vm258_vm5, %v424_v40, 0.0  ;;  %v456_v63 = vmul.f32 %v381_v35, %v1878_v52  ;;  %v494_v7 = vmul.f32 %v1880_v53, %v381_v35 }
 0x1d4   : > { %v427_v41 = vsel %vm261_vm4, %v425_v39, 0.0  ;;  %v468_v16 = vmul.f32 %v426_v42, %v1886_v56  ;;  %v506_v17 = vmul.f32 %v426_v42, %v1888_v57 }
 0x1d5   : > { %v469_v29 = vmul.f32 %v427_v41, %v1886_v56  ;;  %v507_v30 = vmul.f32 %v427_v41, %v1888_v57 }
 0x1d6   : > { %436 = vrot.lane.b32.xlu0 %v382_v33, %s1691_s15 }
 0x1d7   : > { %434 = vrot.lane.b32.xlu1 %v381_v35, %s1691_s15 }
 0x1da   : > { %442 = vrot.lane.b32.xlu0 %v427_v41, %s1690_s5 }
 0x1db   : > { %440 = vrot.lane.b32.xlu1 %v426_v42, %s1690_s5 }
 0x1de   : > { %448 = vrot.lane.b32.xlu0 %v427_v41, %s1691_s15 }
 0x1df   : > { %446 = vrot.lane.b32.xlu1 %v426_v42, %s1691_s15 }
 0x244   : > { %v431_v43 = vpop.permute.xlu0 %430 }
 0x245   : > { %v429_v44 = vpop.permute.xlu1 %428 }
 0x246   : > { %v432_v45 = vsel %vm268_vm2, %v429_v44, %v431_v43  ;;  %v433_v46 = vsel %vm268_vm2, %v431_v43, %v429_v44 }
 0x247   : > { %v452_v47 = vmul.f32 %v433_v46, %v1882_v54  ;;  %v453_v48 = vmul.f32 %v432_v45, %v1882_v54  ;;  %v490_v49 = vmul.f32 %v433_v46, %v1884_v55  ;;  %v491_v58 = vmul.f32 %v432_v45, %v1884_v55 }
 0x248   : > { %v437_v2 = vpop.permute.xlu0 %436 }
 0x249   : > { %v454_v3 = vadd.f32 %v452_v47, %v1890_v59  ;;  %v455_v4 = vadd.f32 %v453_v48, %v1890_v59  ;;  %v492_v5 = vadd.f32 %v490_v49, %v1892_v60  ;;  %v493_v51 = vadd.f32 %v491_v58, %v1892_v60  ;;  %v435_v54 = vpop.permute.xlu1 %434 }
 0x24a   : > { %v438_v55 = vsel %vm275_vm3, %v435_v54, %v437_v2  ;;  %v439_v8 = vsel %vm275_vm3, %v437_v2, %v435_v54 }
 0x24b   : > { %v459_v9 = vadd.f32 %v457_v61, %v455_v4  ;;  %v497_v52 = vadd.f32 %v495_v62, %v493_v51  ;;  %v458_v11 = vadd.f32 %v456_v63, %v454_v3  ;;  %v460_v12 = vmul.f32 %v438_v55, %v1898_v0 }
 0x24c   : > { %v461_v59 = vmul.f32 %v439_v8, %v1898_v0  ;;  %v496_v13 = vadd.f32 %v494_v7, %v492_v5  ;;  %v498_v14 = vmul.f32 %v438_v55, %v1900_v1  ;;  %v499_v60 = vmul.f32 %v439_v8, %v1900_v1  ;;  %v443_v15 = vpop.permute.xlu0 %442 }
 0x24d   : > { %v441_v53 = vpop.permute.xlu1 %440  ;;  %v462_v25 = vadd.f32 %v460_v12, %v458_v11 }
 0x24e   : > { %v463_v18 = vadd.f32 %v461_v59, %v459_v9  ;;  %v444_v19 = vsel %vm268_vm2, %v441_v53, %v443_v15  ;;  %v501_v21 = vadd.f32 %v499_v60, %v497_v52  ;;  %v445_v22 = vsel %vm268_vm2, %v443_v15, %v441_v53 }
 0x24f   : > { %v465_v0 = vmul.f32 %v444_v19, %v1911_v10  ;;  %v503_v24 = vmul.f32 %v444_v19, %v1925_v20  ;;  %v500_v1 = vadd.f32 %v498_v14, %v496_v13  ;;  %v464_v26 = vmul.f32 %v445_v22, %v1911_v10 }
 0x250   : > { %v502_v27 = vmul.f32 %v445_v22, %v1925_v20  ;;  %v449_v28 = vpop.permute.xlu0 %448  ;;  %v2041_v14 = vstv %s1368_s23  ;;  %v2043_v60 = vstv %s1374_s26  ;;  %v2045_v53 = vstv %s1367_s4  ;;  %s1382_s23 = sld [smem:[#allocation3 + $0x25]] }
 0x251   : > { %v467_v31 = vadd.f32 %v465_v0, %v463_v18  ;;  %v505_v32 = vadd.f32 %v503_v24, %v501_v21  ;;  %v447_v33 = vpop.permute.xlu1 %446  ;;  %v466_v34 = vadd.f32 %v464_v26, %v462_v25  ;;  %v2051_v18 = vstv %s1377_s28  ;;  %s1388_s26 = sld [smem:[#allocation3 + $0x2b]] }
 0x252   : > { %v504_v35 = vadd.f32 %v502_v27, %v500_v1  ;;  %v450_v36 = vsel %vm275_vm3, %v447_v33, %v449_v28  ;;  %v451_v38 = vsel %vm275_vm3, %v449_v28, %v447_v33  ;;  %v2053_v19 = vstv %s1379_s6  ;;  %s1391_s28 = sld [smem:[#allocation3 + $0x2e]] }
 0x253   : > { %v471_v39 = vadd.f32 %v469_v29, %v467_v31  ;;  %v509_v10 = vadd.f32 %v507_v30, %v505_v32  ;;  %v472_v20 = vmul.f32 %v450_v36, %v1938_v37  ;;  %v473_v40 = vmul.f32 %v451_v38, %v1938_v37  ;;  %s1381_s4 = sld [smem:[#allocation3 + $0x24]] }
 0x254   : > { %v470_v56 = vadd.f32 %v468_v16, %v466_v34  ;;  %v508_v42 = vadd.f32 %v506_v17, %v504_v35  ;;  %v510_v57 = vmul.f32 %v450_v36, %v1949_v50  ;;  %v511_v41 = vmul.f32 %v451_v38, %v1949_v50  ;;  %s1393_s6 = sld [smem:[#allocation3 + $0x30]] }
 0x255   : > { %v475_v43 = vadd.f32 %v473_v40, %v471_v39  ;;  %v2047_v16 = vstv %s1373_s3  ;;  %v2049_v17 = vstv %s1371_s27  ;;  %v2055_v21 = vstv %s1380_s7  ;;  %s1385_s27 = sld [smem:[#allocation3 + $0x28]] }
 0x256   : > { %v474_v44 = vadd.f32 %v472_v20, %v470_v56  ;;  %v512_v45 = vadd.f32 %v510_v57, %v508_v42  ;;  %v513_v46 = vadd.f32 %v511_v41, %v509_v10  ;;  %v2061_v25 = vstv %s1369_s8  ;;  %s1387_s3 = sld [smem:[#allocation3 + $0x2a]] }
 0x257   : > { %v479_v47 = vmin.f32 %v475_v43, 0.0  ;;  %vm477_vm10 = vcmp.gt.f32.partialorder %v475_v43, 0.0  ;;  %v2063_v1 = vstv %s1375_s14  ;;  %v2074_v34 = vstv %s1370_s19  ;;  %s1394_s7 = sld [smem:[#allocation3 + $0x31]] }
 0x258   : > { %v478_v48 = vmin.f32 %v474_v44, 0.0  ;;  %v516_v49 = vmin.f32 %v512_v45, 0.0  ;;  %v517_v58 = vmin.f32 %v513_v46, 0.0  ;;  %vm476_vm11 = vcmp.gt.f32.partialorder %v474_v44, 0.0  ;;  %s1383_s8 = sld [smem:[#allocation3 + $0x26]] }
 0x259   : > { %v482_v61 = vmul.f32 1.442695, %v479_v47  ;;  %vm515_vm12 = vcmp.gt.f32.partialorder %v513_v46, 0.0  ;;  %vm514_vm13 = vcmp.gt.f32.partialorder %v512_v45, 0.0  ;;  %v2088_v42 = vstv %s2039_s20  ;;  %s1389_s14 = sld [smem:[#allocation3 + $0x2c]] }
 0x25a   : > { %v480_v62 = vmul.f32 1.442695, %v478_v48  ;;  %v518_v63 = vmul.f32 1.442695, %v516_v49  ;;  %v520_v2 = vmul.f32 1.442695, %v517_v58 }
 0x25b   : > { %1521 = vpow2.f32 %v482_v61  ;;  %s1384_s19 = sld [smem:[#allocation3 + $0x27]] }
 0x25c   : > { %1523 = vpow2.f32 %v480_v62  ;;  %s2202_s20 = sld [smem:[#allocation3 + $0x2d]] }
 0x25d   : > { %1525 = vpow2.f32 %v518_v63 }
 0x25e   : > { %1527 = vpow2.f32 %v520_v2 }
 0x268   : > { %v1522_v37 = vpop.eup %1521 }
 0x269   : > { %v1524_v3 = vpop.eup %1523  ;;  %v1421_v4 = vadd.f32 -1.0, %v1522_v37 }
 0x26a   : > { %v1526_v50 = vpop.eup %1525  ;;  %v1420_v5 = vadd.f32 -1.0, %v1524_v3  ;;  %v2101_v3 = vstv %s2065_s21  ;;  %s2228_s21 = sld [smem:[#allocation3 + $0x29]] }
 0x26b   : > { %v1528_v51 = vpop.eup %1527  ;;  %v487_v54 = vsel %vm477_vm10, %v475_v43, %v1421_v4  ;;  %v1422_v52 = vadd.f32 -1.0, %v1526_v50 }
 0x26c   : > { %v489_v7 = vsel %vm261_vm4, %v487_v54, 0.0  ;;  %v486_v55 = vsel %vm476_vm11, %v474_v44, %v1420_v5  ;;  %v1423_v9 = vadd.f32 -1.0, %v1528_v51 }
 0x26d   : > { %530 = vrot.lane.b32.xlu0 %v489_v7, %s1690_s5  ;;  %v488_v8 = vsel %vm258_vm5, %v486_v55, 0.0  ;;  %v524_v12 = vsel %vm514_vm13, %v512_v45, %v1422_v52  ;;  %v560_v30 = vmul.f32 %v2041_v14, %v489_v7  ;;  %v605_v31 = vmul.f32 %v2043_v60, %v489_v7 }
 0x26e   : > { %528 = vrot.lane.b32.xlu1 %v488_v8, %s1690_s5  ;;  %v525_v11 = vsel %vm515_vm12, %v513_v46, %v1423_v9  ;;  %v526_v13 = vsel %vm258_vm5, %v524_v12, 0.0  ;;  %v559_v32 = vmul.f32 %v2041_v14, %v488_v8  ;;  %v604_v20 = vmul.f32 %v2043_v60, %v488_v8 }
 0x26f   : > { %v2029_v59 = vsel %vm261_vm4, %v525_v11, 0.0  ;;  %v574_v58 = vmul.f32 %v2049_v17, %v526_v13  ;;  %v619_v61 = vmul.f32 %v2051_v18, %v526_v13 }
 0x270   : > { %v575_v63 = vmul.f32 %v2049_v17, %v2029_v59  ;;  %v620_v52 = vmul.f32 %v2051_v18, %v2029_v59 }
 0x271   : > { %536 = vrot.lane.b32.xlu0 %v489_v7, %s1691_s15 }
 0x272   : > { %534 = vrot.lane.b32.xlu1 %v488_v8, %s1691_s15 }
 0x275   : > { %542 = vrot.lane.b32.xlu0 %v2029_v59, %s1690_s5 }
 0x276   : > { %540 = vrot.lane.b32.xlu1 %v526_v13, %s1690_s5 }
 0x279   : > { %548 = vrot.lane.b32.xlu0 %v2029_v59, %s1691_s15 }
 0x27a   : > { %546 = vrot.lane.b32.xlu1 %v526_v13, %s1691_s15  ;;  %v2112_v13 = vstv %s2080_s22  ;;  %s2243_s22 = sld [smem:[#allocation3 + $0x2f]] }
 0x2df   : > { %v531_v15 = vpop.permute.xlu0 %530 }
 0x2e0   : > { %v529_v22 = vpop.permute.xlu1 %528 }
 0x2e1   : > { %v532_v0 = vsel %vm268_vm2, %v529_v22, %v531_v15  ;;  %v533_v24 = vsel %vm268_vm2, %v531_v15, %v529_v22 }
 0x2e2   : > { %v554_v26 = vmul.f32 %v2045_v53, %v533_v24  ;;  %v555_v27 = vmul.f32 %v2045_v53, %v532_v0  ;;  %v599_v28 = vmul.f32 %v2047_v16, %v533_v24  ;;  %v600_v29 = vmul.f32 %v2047_v16, %v532_v0 }
 0x2e3   : > { %v537_v33 = vpop.permute.xlu0 %536 }
 0x2e4   : > { %v556_v35 = vadd.f32 %v554_v26, %v2053_v19  ;;  %v557_v36 = vadd.f32 %v555_v27, %v2053_v19  ;;  %v601_v38 = vadd.f32 %v599_v28, %v2055_v21  ;;  %v602_v39 = vadd.f32 %v600_v29, %v2055_v21  ;;  %v535_v10 = vpop.permute.xlu1 %534 }
 0x2e5   : > { %v538_v40 = vsel %vm275_vm3, %v535_v10, %v537_v33  ;;  %v539_v56 = vsel %vm275_vm3, %v537_v33, %v535_v10 }
 0x2e6   : > { %v562_v57 = vadd.f32 %v560_v30, %v557_v36  ;;  %v607_v41 = vadd.f32 %v605_v31, %v602_v39  ;;  %v561_v43 = vadd.f32 %v559_v32, %v556_v35  ;;  %v564_v44 = vmul.f32 %v2061_v25, %v538_v40 }
 0x2e7   : > { %v565_v45 = vmul.f32 %v2061_v25, %v539_v56  ;;  %v606_v46 = vadd.f32 %v604_v20, %v601_v38  ;;  %v609_v47 = vmul.f32 %v2063_v1, %v538_v40  ;;  %v610_v48 = vmul.f32 %v2063_v1, %v539_v56  ;;  %v543_v49 = vpop.permute.xlu0 %542 }
 0x2e8   : > { %v541_v62 = vpop.permute.xlu1 %540  ;;  %v566_v54 = vadd.f32 %v564_v44, %v561_v43 }
 0x2e9   : > { %v567_v2 = vadd.f32 %v565_v45, %v562_v57  ;;  %v544_v37 = vsel %vm268_vm2, %v541_v62, %v543_v49  ;;  %v612_v4 = vadd.f32 %v610_v48, %v607_v41  ;;  %v545_v50 = vsel %vm268_vm2, %v543_v49, %v541_v62 }
 0x2ea   : > { %v570_v5 = vmul.f32 %v2074_v34, %v544_v37  ;;  %v615_v51 = vmul.f32 %v2088_v42, %v544_v37  ;;  %v611_v7 = vadd.f32 %v609_v47, %v606_v46  ;;  %v569_v55 = vmul.f32 %v2074_v34, %v545_v50 }
 0x2eb   : > { %v614_v8 = vmul.f32 %v2088_v42, %v545_v50  ;;  %v549_v9 = vpop.permute.xlu0 %548 }
 0x2ec   : > { %v572_v11 = vadd.f32 %v570_v5, %v567_v2  ;;  %v617_v12 = vadd.f32 %v615_v51, %v612_v4  ;;  %v547_v15 = vpop.permute.xlu1 %546  ;;  %v571_v22 = vadd.f32 %v569_v55, %v566_v54 }
 0x2ed   : > { %v616_v0 = vadd.f32 %v614_v8, %v611_v7  ;;  %v550_v24 = vsel %vm275_vm3, %v547_v15, %v549_v9  ;;  %v551_v26 = vsel %vm275_vm3, %v549_v9, %v547_v15 }
 0x2ee   : > { %v577_v27 = vadd.f32 %v575_v63, %v572_v11  ;;  %v622_v28 = vadd.f32 %v620_v52, %v617_v12  ;;  %v579_v29 = vmul.f32 %v2101_v3, %v550_v24  ;;  %v580_v30 = vmul.f32 %v2101_v3, %v551_v26 }
 0x2ef   : > { %v576_v59 = vadd.f32 %v574_v58, %v571_v22  ;;  %v621_v31 = vadd.f32 %v619_v61, %v616_v0  ;;  %v624_v32 = vmul.f32 %v2112_v13, %v550_v24  ;;  %v625_v33 = vmul.f32 %v2112_v13, %v551_v26 }
 0x2f0   : > { %v582_v35 = vadd.f32 %v580_v30, %v577_v27 }
 0x2f1   : > { %v581_v36 = vadd.f32 %v579_v29, %v576_v59  ;;  %v626_v38 = vadd.f32 %v624_v32, %v621_v31  ;;  %v627_v39 = vadd.f32 %v625_v33, %v622_v28 }
 0x2f2   : > { %v586_v10 = vmin.f32 %v582_v35, 0.0  ;;  %vm584_vm14 = vcmp.gt.f32.partialorder %v582_v35, 0.0 }
 0x2f3   : > { %v585_v20 = vmin.f32 %v581_v36, 0.0  ;;  %v630_v40 = vmin.f32 %v626_v38, 0.0  ;;  %v631_v56 = vmin.f32 %v627_v39, 0.0  ;;  %vm583_vm15 = vcmp.gt.f32.partialorder %v581_v36, 0.0 }
 0x2f4   : > { %v589_v57 = vmul.f32 1.442695, %v586_v10  ;;  %vm629_vm0 = vcmp.gt.f32.partialorder %v627_v39, 0.0  ;;  %vm628_vm6 = vcmp.gt.f32.partialorder %v626_v38, 0.0 }
 0x2f5   : > { %v587_v41 = vmul.f32 1.442695, %v585_v20  ;;  %v632_v43 = vmul.f32 1.442695, %v630_v40  ;;  %v634_v44 = vmul.f32 1.442695, %v631_v56 }
 0x2f6   : > { %1529 = vpow2.f32 %v589_v57 }
 0x2f7   : > { %1531 = vpow2.f32 %v587_v41 }
 0x2f8   : > { %1533 = vpow2.f32 %v632_v43 }
 0x2f9   : > { %1535 = vpow2.f32 %v634_v44 }
 0x303   : > { %v1530_v45 = vpop.eup %1529 }
 0x304   : > { %v1532_v46 = vpop.eup %1531  ;;  %v1425_v47 = vadd.f32 -1.0, %v1530_v45 }
 0x305   : > { %v1534_v48 = vpop.eup %1533  ;;  %v1424_v49 = vadd.f32 -1.0, %v1532_v46 }
 0x306   : > { %v1536_v58 = vpop.eup %1535  ;;  %v594_v61 = vsel %vm584_vm14, %v582_v35, %v1425_v47  ;;  %v1426_v4 = vadd.f32 -1.0, %v1534_v48 }
 0x307   : > { %v596_v62 = vsel %vm261_vm4, %v594_v61, 0.0  ;;  %v593_v63 = vsel %vm583_vm15, %v581_v36, %v1424_v49  ;;  %v1427_v37 = vadd.f32 -1.0, %v1536_v58 }
 0x308   : > { %644 = vrot.lane.b32.xlu0 %v596_v62, %s1690_s5  ;;  %v595_v2 = vsel %vm258_vm5, %v593_v63, 0.0  ;;  %v638_v5 = vsel %vm628_vm6, %v626_v38, %v1426_v4  ;;  %v671_v22 = vmul.f32 %v596_v62, %v2041_v14  ;;  %v709_v0 = vmul.f32 %v2043_v60, %v596_v62 }
 0x309   : > { %642 = vrot.lane.b32.xlu1 %v595_v2, %s1690_s5  ;;  %v639_v50 = vsel %vm629_vm0, %v627_v39, %v1427_v37  ;;  %v640_v54 = vsel %vm258_vm5, %v638_v5, 0.0  ;;  %v670_v24 = vmul.f32 %v595_v2, %v2041_v14  ;;  %v708_v59 = vmul.f32 %v2043_v60, %v595_v2 }
 0x30a   : > { %v641_v51 = vsel %vm261_vm4, %v639_v50, 0.0  ;;  %v682_v10 = vmul.f32 %v640_v54, %v2049_v17  ;;  %v720_v20 = vmul.f32 %v640_v54, %v2051_v18 }
 0x30b   : > { %v683_v48 = vmul.f32 %v641_v51, %v2049_v17  ;;  %v721_v49 = vmul.f32 %v641_v51, %v2051_v18 }
 0x30c   : > { %650 = vrot.lane.b32.xlu0 %v596_v62, %s1691_s15 }
 0x30d   : > { %648 = vrot.lane.b32.xlu1 %v595_v2, %s1691_s15 }
 0x310   : > { %656 = vrot.lane.b32.xlu0 %v641_v51, %s1690_s5 }
 0x311   : > { %654 = vrot.lane.b32.xlu1 %v640_v54, %s1690_s5 }
 0x314   : > { %662 = vrot.lane.b32.xlu0 %v641_v51, %s1691_s15 }
 0x315   : > { %660 = vrot.lane.b32.xlu1 %v640_v54, %s1691_s15 }
 0x37a   : > { %v645_v7 = vpop.permute.xlu0 %644 }
 0x37b   : > { %v643_v55 = vpop.permute.xlu1 %642 }
 0x37c   : > { %v646_v8 = vsel %vm268_vm2, %v643_v55, %v645_v7  ;;  %v647_v9 = vsel %vm268_vm2, %v645_v7, %v643_v55 }
 0x37d   : > { %v666_v52 = vmul.f32 %v647_v9, %v2045_v53  ;;  %v667_v11 = vmul.f32 %v646_v8, %v2045_v53  ;;  %v704_v12 = vmul.f32 %v647_v9, %v2047_v16  ;;  %v705_v15 = vmul.f32 %v646_v8, %v2047_v16 }
 0x37e   : > { %v651_v26 = vpop.permute.xlu0 %650 }
 0x37f   : > { %v668_v27 = vadd.f32 %v666_v52, %v2053_v19  ;;  %v669_v28 = vadd.f32 %v667_v11, %v2053_v19  ;;  %v706_v29 = vadd.f32 %v704_v12, %v2055_v21  ;;  %v707_v30 = vadd.f32 %v705_v15, %v2055_v21  ;;  %v649_v53 = vpop.permute.xlu1 %648 }
 0x380   : > { %v652_v16 = vsel %vm275_vm3, %v649_v53, %v651_v26  ;;  %v653_v31 = vsel %vm275_vm3, %v651_v26, %v649_v53 }
 0x381   : > { %v673_v32 = vadd.f32 %v671_v22, %v669_v28  ;;  %v711_v14 = vadd.f32 %v709_v0, %v707_v30  ;;  %v672_v33 = vadd.f32 %v670_v24, %v668_v27  ;;  %v674_v35 = vmul.f32 %v652_v16, %v2061_v25 }
 0x382   : > { %v675_v19 = vmul.f32 %v653_v31, %v2061_v25  ;;  %v710_v36 = vadd.f32 %v708_v59, %v706_v29  ;;  %v712_v38 = vmul.f32 %v652_v16, %v2063_v1  ;;  %v713_v21 = vmul.f32 %v653_v31, %v2063_v1  ;;  %v657_v39 = vpop.permute.xlu0 %656 }
 0x383   : > { %v655_v60 = vpop.permute.xlu1 %654  ;;  %v676_v44 = vadd.f32 %v674_v35, %v672_v33 }
 0x384   : > { %v677_v40 = vadd.f32 %v675_v19, %v673_v32  ;;  %v658_v56 = vsel %vm268_vm2, %v655_v60, %v657_v39  ;;  %v715_v57 = vadd.f32 %v713_v21, %v711_v14  ;;  %v659_v41 = vsel %vm268_vm2, %v657_v39, %v655_v60 }
 0x385   : > { %v679_v25 = vmul.f32 %v658_v56, %v2074_v34  ;;  %v717_v43 = vmul.f32 %v658_v56, %v2088_v42  ;;  %v714_v1 = vadd.f32 %v712_v38, %v710_v36  ;;  %v678_v45 = vmul.f32 %v659_v41, %v2074_v34 }
 0x386   : > { %v716_v46 = vmul.f32 %v659_v41, %v2088_v42  ;;  %v663_v47 = vpop.permute.xlu0 %662  ;;  %v2204_v38 = vstv %s1382_s23  ;;  %v2206_v21 = vstv %s1388_s26  ;;  %v2208_v60 = vstv %s1381_s4  ;;  %s1396_s23 = sld [smem:[#allocation3 + $0x33]] }
 0x387   : > { %v681_v58 = vadd.f32 %v679_v25, %v677_v40  ;;  %v719_v61 = vadd.f32 %v717_v43, %v715_v57  ;;  %v661_v62 = vpop.permute.xlu1 %660  ;;  %v680_v63 = vadd.f32 %v678_v45, %v676_v44  ;;  %v2214_v40 = vstv %s1391_s28  ;;  %s1402_s26 = sld [smem:[#allocation3 + $0x39]] }
 0x388   : > { %v718_v2 = vadd.f32 %v716_v46, %v714_v1  ;;  %v664_v37 = vsel %vm275_vm3, %v661_v62, %v663_v47  ;;  %v665_v4 = vsel %vm275_vm3, %v663_v47, %v661_v62  ;;  %v2216_v56 = vstv %s1393_s6  ;;  %s1405_s28 = sld [smem:[#allocation3 + $0x3c]] }
 0x389   : > { %v685_v50 = vadd.f32 %v683_v48, %v681_v58  ;;  %v723_v34 = vadd.f32 %v721_v49, %v719_v61  ;;  %v686_v42 = vmul.f32 %v664_v37, %v2101_v3  ;;  %v687_v5 = vmul.f32 %v665_v4, %v2101_v3  ;;  %s1395_s4 = sld [smem:[#allocation3 + $0x32]] }
 0x38a   : > { %v684_v17 = vadd.f32 %v682_v10, %v680_v63  ;;  %v722_v54 = vadd.f32 %v720_v20, %v718_v2  ;;  %v724_v18 = vmul.f32 %v664_v37, %v2112_v13  ;;  %v725_v51 = vmul.f32 %v665_v4, %v2112_v13  ;;  %s1407_s6 = sld [smem:[#allocation3 + $0x3e]] }
 0x38b   : > { %v689_v7 = vadd.f32 %v687_v5, %v685_v50  ;;  %v2210_v10 = vstv %s1387_s3  ;;  %v2212_v20 = vstv %s1385_s27  ;;  %v2218_v57 = vstv %s1394_s7  ;;  %s1399_s27 = sld [smem:[#allocation3 + $0x36]] }
 0x38c   : > { %v688_v55 = vadd.f32 %v686_v42, %v684_v17  ;;  %v726_v8 = vadd.f32 %v724_v18, %v722_v54  ;;  %v727_v9 = vadd.f32 %v725_v51, %v723_v34  ;;  %v2224_v44 = vstv %s1383_s8  ;;  %s1401_s3 = sld [smem:[#allocation3 + $0x38]] }
 0x38d   : > { %v693_v52 = vmin.f32 %v689_v7, 0.0  ;;  %vm691_vm7 = vcmp.gt.f32.partialorder %v689_v7, 0.0  ;;  %v2226_v1 = vstv %s1389_s14  ;;  %v2237_v63 = vstv %s1384_s19  ;;  %s1408_s7 = sld [smem:[#allocation3 + $0x3f]] }
 0x38e   : > { %v692_v11 = vmin.f32 %v688_v55, 0.0  ;;  %v730_v12 = vmin.f32 %v726_v8, 0.0  ;;  %v731_v15 = vmin.f32 %v727_v9, 0.0  ;;  %vm690_vm8 = vcmp.gt.f32.partialorder %v688_v55, 0.0  ;;  %s1397_s8 = sld [smem:[#allocation3 + $0x34]] }
 0x38f   : > { %v696_v22 = vmul.f32 1.442695, %v693_v52  ;;  %vm729_vm9 = vcmp.gt.f32.partialorder %v727_v9, 0.0  ;;  %vm728_vm10 = vcmp.gt.f32.partialorder %v726_v8, 0.0  ;;  %v2251_v54 = vstv %s2202_s20  ;;  %s1403_s14 = sld [smem:[#allocation3 + $0x3a]] }
 0x390   : > { %v694_v0 = vmul.f32 1.442695, %v692_v11  ;;  %v732_v24 = vmul.f32 1.442695, %v730_v12  ;;  %v734_v26 = vmul.f32 1.442695, %v731_v15 }
 0x391   : > { %1537 = vpow2.f32 %v696_v22  ;;  %s1398_s19 = sld [smem:[#allocation3 + $0x35]] }
 0x392   : > { %1539 = vpow2.f32 %v694_v0  ;;  %s2365_s20 = sld [smem:[#allocation3 + $0x3b]] }
 0x393   : > { %1541 = vpow2.f32 %v732_v24 }
 0x394   : > { %1543 = vpow2.f32 %v734_v26 }
 0x39e   : > { %v1538_v3 = vpop.eup %1537 }
 0x39f   : > { %v1540_v27 = vpop.eup %1539  ;;  %v1429_v28 = vadd.f32 -1.0, %v1538_v3 }
 0x3a0   : > { %v1542_v13 = vpop.eup %1541  ;;  %v1428_v29 = vadd.f32 -1.0, %v1540_v27  ;;  %v2264_v27 = vstv %s2228_s21  ;;  %s2391_s21 = sld [smem:[#allocation3 + $0x37]] }
 0x3a1   : > { %v1544_v30 = vpop.eup %1543  ;;  %v701_v53 = vsel %vm691_vm7, %v689_v7, %v1429_v28  ;;  %v1430_v14 = vadd.f32 -1.0, %v1542_v13 }
 0x3a2   : > { %v703_v59 = vsel %vm261_vm4, %v701_v53, 0.0  ;;  %v700_v16 = vsel %vm690_vm8, %v688_v55, %v1428_v29  ;;  %v1431_v32 = vadd.f32 -1.0, %v1544_v30 }
 0x3a3   : > { %744 = vrot.lane.b32.xlu0 %v703_v59, %s1690_s5  ;;  %v702_v31 = vsel %vm258_vm5, %v700_v16, 0.0  ;;  %v738_v35 = vsel %vm728_vm10, %v726_v8, %v1430_v14  ;;  %v774_v49 = vmul.f32 %v2204_v38, %v703_v59  ;;  %v819_v58 = vmul.f32 %v2206_v21, %v703_v59 }
 0x3a4   : > { %742 = vrot.lane.b32.xlu1 %v702_v31, %s1690_s5  ;;  %v739_v33 = vsel %vm729_vm9, %v727_v9, %v1431_v32  ;;  %v740_v36 = vsel %vm258_vm5, %v738_v35, 0.0  ;;  %v773_v61 = vmul.f32 %v2204_v38, %v702_v31  ;;  %v818_v42 = vmul.f32 %v2206_v21, %v702_v31 }
 0x3a5   : > { %v2192_v19 = vsel %vm261_vm4, %v739_v33, 0.0  ;;  %v788_v15 = vmul.f32 %v2212_v20, %v740_v36  ;;  %v833_v22 = vmul.f32 %v2214_v40, %v740_v36 }
 0x3a6   : > { %v789_v24 = vmul.f32 %v2212_v20, %v2192_v19  ;;  %v834_v14 = vmul.f32 %v2214_v40, %v2192_v19 }
 0x3a7   : > { %750 = vrot.lane.b32.xlu0 %v703_v59, %s1691_s15 }
 0x3a8   : > { %748 = vrot.lane.b32.xlu1 %v702_v31, %s1691_s15 }
 0x3ab   : > { %756 = vrot.lane.b32.xlu0 %v2192_v19, %s1690_s5 }
 0x3ac   : > { %754 = vrot.lane.b32.xlu1 %v740_v36, %s1690_s5 }
 0x3af   : > { %762 = vrot.lane.b32.xlu0 %v2192_v19, %s1691_s15 }
 0x3b0   : > { %760 = vrot.lane.b32.xlu1 %v740_v36, %s1691_s15  ;;  %v2275_v36 = vstv %s2243_s22  ;;  %s2406_s22 = sld [smem:[#allocation3 + $0x3d]] }
 0x415   : > { %v745_v39 = vpop.permute.xlu0 %744 }
 0x416   : > { %v743_v41 = vpop.permute.xlu1 %742 }
 0x417   : > { %v746_v25 = vsel %vm268_vm2, %v743_v41, %v745_v39  ;;  %v747_v43 = vsel %vm268_vm2, %v745_v39, %v743_v41 }
 0x418   : > { %v768_v45 = vmul.f32 %v2208_v60, %v747_v43  ;;  %v769_v46 = vmul.f32 %v2208_v60, %v746_v25  ;;  %v813_v47 = vmul.f32 %v2210_v10, %v747_v43  ;;  %v814_v48 = vmul.f32 %v2210_v10, %v746_v25 }
 0x419   : > { %v751_v62 = vpop.permute.xlu0 %750 }
 0x41a   : > { %v770_v2 = vadd.f32 %v768_v45, %v2216_v56  ;;  %v771_v37 = vadd.f32 %v769_v46, %v2216_v56  ;;  %v815_v4 = vadd.f32 %v813_v47, %v2218_v57  ;;  %v816_v50 = vadd.f32 %v814_v48, %v2218_v57  ;;  %v749_v34 = vpop.permute.xlu1 %748 }
 0x41b   : > { %v752_v5 = vsel %vm275_vm3, %v749_v34, %v751_v62  ;;  %v753_v17 = vsel %vm275_vm3, %v751_v62, %v749_v34 }
 0x41c   : > { %v776_v18 = vadd.f32 %v774_v49, %v771_v37  ;;  %v821_v51 = vadd.f32 %v819_v58, %v816_v50  ;;  %v775_v7 = vadd.f32 %v773_v61, %v770_v2  ;;  %v778_v55 = vmul.f32 %v2224_v44, %v752_v5 }
 0x41d   : > { %v779_v8 = vmul.f32 %v2224_v44, %v753_v17  ;;  %v820_v9 = vadd.f32 %v818_v42, %v815_v4  ;;  %v823_v52 = vmul.f32 %v2226_v1, %v752_v5  ;;  %v824_v11 = vmul.f32 %v2226_v1, %v753_v17  ;;  %v757_v12 = vpop.permute.xlu0 %756 }
 0x41e   : > { %v755_v0 = vpop.permute.xlu1 %754  ;;  %v780_v53 = vadd.f32 %v778_v55, %v775_v7 }
 0x41f   : > { %v781_v26 = vadd.f32 %v779_v8, %v776_v18  ;;  %v758_v3 = vsel %vm268_vm2, %v755_v0, %v757_v12  ;;  %v826_v28 = vadd.f32 %v824_v11, %v821_v51  ;;  %v759_v13 = vsel %vm268_vm2, %v757_v12, %v755_v0 }
 0x420   : > { %v784_v29 = vmul.f32 %v2237_v63, %v758_v3  ;;  %v829_v30 = vmul.f32 %v2251_v54, %v758_v3  ;;  %v825_v59 = vadd.f32 %v823_v52, %v820_v9  ;;  %v783_v16 = vmul.f32 %v2237_v63, %v759_v13 }
 0x421   : > { %v828_v31 = vmul.f32 %v2251_v54, %v759_v13  ;;  %v763_v32 = vpop.permute.xlu0 %762 }
 0x422   : > { %v786_v33 = vadd.f32 %v784_v29, %v781_v26  ;;  %v831_v35 = vadd.f32 %v829_v30, %v826_v28  ;;  %v761_v39 = vpop.permute.xlu1 %760  ;;  %v785_v41 = vadd.f32 %v783_v16, %v780_v53 }
 0x423   : > { %v830_v25 = vadd.f32 %v828_v31, %v825_v59  ;;  %v764_v43 = vsel %vm275_vm3, %v761_v39, %v763_v32  ;;  %v765_v45 = vsel %vm275_vm3, %v763_v32, %v761_v39 }
 0x424   : > { %v791_v46 = vadd.f32 %v789_v24, %v786_v33  ;;  %v836_v47 = vadd.f32 %v834_v14, %v831_v35  ;;  %v793_v48 = vmul.f32 %v2264_v27, %v764_v43  ;;  %v794_v49 = vmul.f32 %v2264_v27, %v765_v45 }
 0x425   : > { %v790_v19 = vadd.f32 %v788_v15, %v785_v41  ;;  %v835_v58 = vadd.f32 %v833_v22, %v830_v25  ;;  %v838_v61 = vmul.f32 %v2275_v36, %v764_v43  ;;  %v839_v62 = vmul.f32 %v2275_v36, %v765_v45 }
 0x426   : > { %v796_v2 = vadd.f32 %v794_v49, %v791_v46 }
 0x427   : > { %v795_v37 = vadd.f32 %v793_v48, %v790_v19  ;;  %v840_v4 = vadd.f32 %v838_v61, %v835_v58  ;;  %v841_v50 = vadd.f32 %v839_v62, %v836_v47 }
 0x428   : > { %v800_v34 = vmin.f32 %v796_v2, 0.0  ;;  %vm798_vm11 = vcmp.gt.f32.partialorder %v796_v2, 0.0 }
 0x429   : > { %v799_v42 = vmin.f32 %v795_v37, 0.0  ;;  %v844_v5 = vmin.f32 %v840_v4, 0.0  ;;  %v845_v17 = vmin.f32 %v841_v50, 0.0  ;;  %vm797_vm12 = vcmp.gt.f32.partialorder %v795_v37, 0.0 }
 0x42a   : > { %v803_v18 = vmul.f32 1.442695, %v800_v34  ;;  %vm843_vm13 = vcmp.gt.f32.partialorder %v841_v50, 0.0  ;;  %vm842_vm14 = vcmp.gt.f32.partialorder %v840_v4, 0.0 }
 0x42b   : > { %v801_v51 = vmul.f32 1.442695, %v799_v42  ;;  %v846_v7 = vmul.f32 1.442695, %v844_v5  ;;  %v848_v55 = vmul.f32 1.442695, %v845_v17 }
 0x42c   : > { %1545 = vpow2.f32 %v803_v18 }
 0x42d   : > { %1547 = vpow2.f32 %v801_v51 }
 0x42e   : > { %1549 = vpow2.f32 %v846_v7 }
 0x42f   : > { %1551 = vpow2.f32 %v848_v55 }
 0x439   : > { %v1546_v8 = vpop.eup %1545 }
 0x43a   : > { %v1548_v9 = vpop.eup %1547  ;;  %v1433_v52 = vadd.f32 -1.0, %v1546_v8 }
 0x43b   : > { %v1550_v11 = vpop.eup %1549  ;;  %v1432_v12 = vadd.f32 -1.0, %v1548_v9 }
 0x43c   : > { %v1552_v15 = vpop.eup %1551  ;;  %v808_v22 = vsel %vm798_vm11, %v796_v2, %v1433_v52  ;;  %v1434_v28 = vadd.f32 -1.0, %v1550_v11 }
 0x43d   : > { %v810_v0 = vsel %vm261_vm4, %v808_v22, 0.0  ;;  %v807_v24 = vsel %vm797_vm12, %v795_v37, %v1432_v12  ;;  %v1435_v3 = vadd.f32 -1.0, %v1552_v15 }
 0x43e   : > { %858 = vrot.lane.b32.xlu0 %v810_v0, %s1690_s5  ;;  %v809_v26 = vsel %vm258_vm5, %v807_v24, 0.0  ;;  %v852_v29 = vsel %vm842_vm14, %v840_v4, %v1434_v28  ;;  %v885_v41 = vmul.f32 %v810_v0, %v2204_v38  ;;  %v923_v25 = vmul.f32 %v2206_v21, %v810_v0 }
 0x43f   : > { %856 = vrot.lane.b32.xlu1 %v809_v26, %s1690_s5  ;;  %v853_v13 = vsel %vm843_vm13, %v841_v50, %v1435_v3  ;;  %v854_v53 = vsel %vm258_vm5, %v852_v29, 0.0  ;;  %v884_v43 = vmul.f32 %v809_v26, %v2204_v38  ;;  %v922_v19 = vmul.f32 %v2206_v21, %v809_v26 }
 0x440   : > { %v855_v30 = vsel %vm261_vm4, %v853_v13, 0.0  ;;  %v896_v34 = vmul.f32 %v854_v53, %v2212_v20  ;;  %v934_v42 = vmul.f32 %v854_v53, %v2214_v40 }
 0x441   : > { %v897_v11 = vmul.f32 %v855_v30, %v2212_v20  ;;  %v935_v12 = vmul.f32 %v855_v30, %v2214_v40 }
 0x442   : > { %864 = vrot.lane.b32.xlu0 %v810_v0, %s1691_s15 }
 0x443   : > { %862 = vrot.lane.b32.xlu1 %v809_v26, %s1691_s15 }
 0x446   : > { %870 = vrot.lane.b32.xlu0 %v855_v30, %s1690_s5 }
 0x447   : > { %868 = vrot.lane.b32.xlu1 %v854_v53, %s1690_s5 }
 0x44a   : > { %876 = vrot.lane.b32.xlu0 %v855_v30, %s1691_s15 }
 0x44b   : > { %874 = vrot.lane.b32.xlu1 %v854_v53, %s1691_s15 }
 0x4b0   : > { %v859_v59 = vpop.permute.xlu0 %858 }
 0x4b1   : > { %v857_v16 = vpop.permute.xlu1 %856 }
 0x4b2   : > { %v860_v31 = vsel %vm268_vm2, %v857_v16, %v859_v59  ;;  %v861_v32 = vsel %vm268_vm2, %v859_v59, %v857_v16 }
 0x4b3   : > { %v880_v14 = vmul.f32 %v861_v32, %v2208_v60  ;;  %v881_v33 = vmul.f32 %v860_v31, %v2208_v60  ;;  %v918_v35 = vmul.f32 %v861_v32, %v2210_v10  ;;  %v919_v39 = vmul.f32 %v860_v31, %v2210_v10 }
 0x4b4   : > { %v865_v45 = vpop.permute.xlu0 %864 }
 0x4b5   : > { %v882_v46 = vadd.f32 %v880_v14, %v2216_v56  ;;  %v883_v47 = vadd.f32 %v881_v33, %v2216_v56  ;;  %v920_v48 = vadd.f32 %v918_v35, %v2218_v57  ;;  %v921_v49 = vadd.f32 %v919_v39, %v2218_v57  ;;  %v863_v60 = vpop.permute.xlu1 %862 }
 0x4b6   : > { %v866_v10 = vsel %vm275_vm3, %v863_v60, %v865_v45  ;;  %v867_v58 = vsel %vm275_vm3, %v865_v45, %v863_v60 }
 0x4b7   : > { %v887_v61 = vadd.f32 %v885_v41, %v883_v47  ;;  %v925_v38 = vadd.f32 %v923_v25, %v921_v49  ;;  %v886_v62 = vadd.f32 %v884_v43, %v882_v46  ;;  %v888_v2 = vmul.f32 %v866_v10, %v2224_v44 }
 0x4b8   : > { %v889_v56 = vmul.f32 %v867_v58, %v2224_v44  ;;  %v924_v37 = vadd.f32 %v922_v19, %v920_v48  ;;  %v926_v4 = vmul.f32 %v866_v10, %v2226_v1  ;;  %v927_v57 = vmul.f32 %v867_v58, %v2226_v1  ;;  %v871_v50 = vpop.permute.xlu0 %870 }
 0x4b9   : > { %v869_v21 = vpop.permute.xlu1 %868  ;;  %v890_v55 = vadd.f32 %v888_v2, %v886_v62 }
 0x4ba   : > { %v891_v5 = vadd.f32 %v889_v56, %v887_v61  ;;  %v872_v17 = vsel %vm268_vm2, %v869_v21, %v871_v50  ;;  %v929_v18 = vadd.f32 %v927_v57, %v925_v38  ;;  %v873_v51 = vsel %vm268_vm2, %v871_v50, %v869_v21 }
 0x4bb   : > { %v893_v44 = vmul.f32 %v872_v17, %v2237_v63  ;;  %v931_v7 = vmul.f32 %v872_v17, %v2251_v54  ;;  %v928_v1 = vadd.f32 %v926_v4, %v924_v37  ;;  %v892_v8 = vmul.f32 %v873_v51, %v2237_v63 }
 0x4bc   : > { %v930_v9 = vmul.f32 %v873_v51, %v2251_v54  ;;  %v877_v52 = vpop.permute.xlu0 %876  ;;  %v2367_v4 = vstv %s1396_s23  ;;  %v2369_v57 = vstv %s1402_s26  ;;  %v2371_v21 = vstv %s1395_s4  ;;  %s1409_s23 = sld [smem:[#allocation3 + $0x40]] }
 0x4bd   : > { %v895_v15 = vadd.f32 %v893_v44, %v891_v5  ;;  %v933_v22 = vadd.f32 %v931_v7, %v929_v18  ;;  %v875_v0 = vpop.permute.xlu1 %874  ;;  %v894_v24 = vadd.f32 %v892_v8, %v890_v55  ;;  %v2377_v5 = vstv %s1405_s28  ;;  %s1410_s26 = sld [smem:[#allocation3 + $0x41]] }
 0x4be   : > { %v932_v26 = vadd.f32 %v930_v9, %v928_v1  ;;  %v878_v3 = vsel %vm275_vm3, %v875_v0, %v877_v52  ;;  %v879_v28 = vsel %vm275_vm3, %v877_v52, %v875_v0  ;;  %v2379_v17 = vstv %s1407_s6  ;;  %s1411_s28 = sld [smem:[#allocation3 + $0x42]]  ;;  %s170_s6 = scalar_lea.vmem [#allocation8], %s1344_s30 }
 0x4bf   : > { %v899_v13 = vadd.f32 %v897_v11, %v895_v15  ;;  %v937_v63 = vadd.f32 %v935_v12, %v933_v22  ;;  %v900_v54 = vmul.f32 %v878_v3, %v2264_v27  ;;  %v901_v29 = vmul.f32 %v879_v28, %v2264_v27  ;;  %s2524_s4 = sld [smem:[#allocation3 + $0x43]] }
 0x4c0   : > { %v898_v20 = vadd.f32 %v896_v34, %v894_v24  ;;  %v936_v53 = vadd.f32 %v934_v42, %v932_v26  ;;  %v938_v40 = vmul.f32 %v878_v3, %v2275_v36  ;;  %v939_v30 = vmul.f32 %v879_v28, %v2275_v36 }
 0x4c1   : > { %v903_v59 = vadd.f32 %v901_v29, %v899_v13  ;;  %v2373_v34 = vstv %s1401_s3  ;;  %v2375_v42 = vstv %s1399_s27  ;;  %v2381_v18 = vstv %s1408_s7  ;;  %s1415_s27 = sld [smem:[#allocation3 + $0x46]]  ;;  %s1254_s7 = sshll.u32 %s170_s6, 4  ;;  %s1255_s7 = int_to_ptr.vmem [resolvable:$true] %s1254_s7 }
 0x4c2   : > { %v902_v16 = vadd.f32 %v900_v54, %v898_v20  ;;  %v940_v31 = vadd.f32 %v938_v40, %v936_v53  ;;  %v941_v32 = vadd.f32 %v939_v30, %v937_v63  ;;  %v2387_v55 = vstv %s1397_s8  ;;  %s2526_s3 = sld [smem:[#allocation3 + $0x44]] }
 0x4c3   : > { %v907_v14 = vmin.f32 %v903_v59, 0.0  ;;  %vm905_vm15 = vcmp.gt.f32.partialorder %v903_v59, 0.0  ;;  %v2389_v1 = vstv %s1403_s14  ;;  %v2400_v24 = vstv %s1398_s19 }
 0x4c4   : > { %v906_v33 = vmin.f32 %v902_v16, 0.0  ;;  %v944_v35 = vmin.f32 %v940_v31, 0.0  ;;  %v945_v39 = vmin.f32 %v941_v32, 0.0  ;;  %vm904_vm0 = vcmp.gt.f32.partialorder %v902_v16, 0.0 }
 0x4c5   : > { %v910_v41 = vmul.f32 1.442695, %v907_v14  ;;  %vm943_vm6 = vcmp.gt.f32.partialorder %v941_v32, 0.0  ;;  %vm942_vm7 = vcmp.gt.f32.partialorder %v940_v31, 0.0  ;;  %v2414_v53 = vstv %s2365_s20  ;;  %s1241_s20 = scalar_lea.sflag [#allocation5], %s1811_s29 }
 0x4c6   : > { %v908_v25 = vmul.f32 1.442695, %v906_v33  ;;  %v946_v43 = vmul.f32 1.442695, %v944_v35  ;;  %v948_v45 = vmul.f32 1.442695, %v945_v39 }
 0x4c7   : > { %1553 = vpow2.f32 %v910_v41 }
 0x4c8   : > { %1555 = vpow2.f32 %v908_v25 }
 0x4c9   : > { %1557 = vpow2.f32 %v946_v43 }
 0x4ca   : > { %1559 = vpow2.f32 %v948_v45 }
 0x4d4   : > { %v1554_v27 = vpop.eup %1553 }
 0x4d5   : > { %v1556_v46 = vpop.eup %1555  ;;  %v1437_v47 = vadd.f32 -1.0, %v1554_v27 }
 0x4d6   : > { %v1558_v36 = vpop.eup %1557  ;;  %v1436_v48 = vadd.f32 -1.0, %v1556_v46  ;;  %v2427_v46 = vstv %s2391_s21  ;;  %s1616_s21 = scalar_lea.vmem %s1255_s7, 128 }
 0x4d7   : > { %v1560_v49 = vpop.eup %1559  ;;  %v915_v60 = vsel %vm905_vm15, %v903_v59, %v1437_v47  ;;  %v1438_v38 = vadd.f32 -1.0, %v1558_v36  ;;  %p1617_p6 = scmp.ne.s32.totalorder %s1255_s7, %s1616_s21 }
 0x4d8   : > { %v917_v19 = vsel %vm261_vm4, %v915_v60, 0.0  ;;  %v914_v10 = vsel %vm904_vm0, %v902_v16, %v1436_v48  ;;  %v1439_v61 = vadd.f32 -1.0, %v1560_v49 }
 0x4d9   : > { %958 = vrot.lane.b32.xlu0 %v917_v19, %s1690_s5  ;;  %v916_v58 = vsel %vm258_vm5, %v914_v10, 0.0  ;;  %v952_v2 = vsel %vm942_vm7, %v940_v31, %v1438_v38  ;;  %v988_v12 = vmul.f32 %v2367_v4, %v917_v19  ;;  %v1033_v15 = vmul.f32 %v2369_v57, %v917_v19  ;;  %p1618_p7 = pnand %p1617_p6, %p2615_p8 }
 0x4da   : > { %956 = vrot.lane.b32.xlu1 %v916_v58, %s1690_s5  ;;  %v953_v62 = vsel %vm943_vm6, %v941_v32, %v1439_v61  ;;  %v954_v37 = vsel %vm258_vm5, %v952_v2, 0.0  ;;  %v987_v22 = vmul.f32 %v2367_v4, %v916_v58  ;;  %v1032_v54 = vmul.f32 %v2369_v57, %v916_v58 }
 0x4db   : > { %v2355_v56 = vsel %vm261_vm4, %v953_v62, 0.0  ;;  %v1002_v39 = vmul.f32 %v2375_v42, %v954_v37  ;;  %v1047_v41 = vmul.f32 %v2377_v5, %v954_v37  ;;  %p1619_p10 = pneg %p1618_p7 }
 0x4dc   : > { %v1003_v43 = vmul.f32 %v2375_v42, %v2355_v56  ;;  %v1048_v38 = vmul.f32 %v2377_v5, %v2355_v56 }
 0x4dd   : > { %964 = vrot.lane.b32.xlu0 %v917_v19, %s1691_s15 }
 0x4de   : > { %962 = vrot.lane.b32.xlu1 %v916_v58, %s1691_s15 }
 0x4e1   : > { %970 = vrot.lane.b32.xlu0 %v2355_v56, %s1690_s5 }
 0x4e2   : > { %968 = vrot.lane.b32.xlu1 %v954_v37, %s1690_s5 }
 0x4e5   : > { %976 = vrot.lane.b32.xlu0 %v2355_v56, %s1691_s15 }
 0x4e6   : > { %974 = vrot.lane.b32.xlu1 %v954_v37, %s1691_s15  ;;  %v2438_v37 = vstv %s2406_s22 }
 0x54b   : > { %v959_v50 = vpop.permute.xlu0 %958 }
 0x54c   : > { %v957_v51 = vpop.permute.xlu1 %956 }
 0x54d   : > { %v960_v44 = vsel %vm268_vm2, %v957_v51, %v959_v50  ;;  %v961_v7 = vsel %vm268_vm2, %v959_v50, %v957_v51 }
 0x54e   : > { %v982_v8 = vmul.f32 %v2371_v21, %v961_v7  ;;  %v983_v9 = vmul.f32 %v2371_v21, %v960_v44  ;;  %v1027_v52 = vmul.f32 %v2373_v34, %v961_v7  ;;  %v1028_v11 = vmul.f32 %v2373_v34, %v960_v44 }
 0x54f   : > { %v965_v0 = vpop.permute.xlu0 %964 }
 0x550   : > { %v984_v26 = vadd.f32 %v982_v8, %v2379_v17  ;;  %v985_v3 = vadd.f32 %v983_v9, %v2379_v17  ;;  %v1029_v28 = vadd.f32 %v1027_v52, %v2381_v18  ;;  %v1030_v13 = vadd.f32 %v1028_v11, %v2381_v18  ;;  %v963_v63 = vpop.permute.xlu1 %962 }
 0x551   : > { %v966_v29 = vsel %vm275_vm3, %v963_v63, %v965_v0  ;;  %v967_v20 = vsel %vm275_vm3, %v965_v0, %v963_v63 }
 0x552   : > { %v990_v40 = vadd.f32 %v988_v12, %v985_v3  ;;  %v1035_v30 = vadd.f32 %v1033_v15, %v1030_v13  ;;  %v989_v59 = vadd.f32 %v987_v22, %v984_v26  ;;  %v992_v16 = vmul.f32 %v2387_v55, %v966_v29 }
 0x553   : > { %v993_v31 = vmul.f32 %v2387_v55, %v967_v20  ;;  %v1034_v32 = vadd.f32 %v1032_v54, %v1029_v28  ;;  %v1037_v14 = vmul.f32 %v2389_v1, %v966_v29  ;;  %v1038_v33 = vmul.f32 %v2389_v1, %v967_v20  ;;  %v971_v35 = vpop.permute.xlu0 %970 }
 0x554   : > { %v969_v25 = vpop.permute.xlu1 %968  ;;  %v994_v60 = vadd.f32 %v992_v16, %v989_v59 }
 0x555   : > { %v995_v45 = vadd.f32 %v993_v31, %v990_v40  ;;  %v972_v27 = vsel %vm268_vm2, %v969_v25, %v971_v35  ;;  %v1040_v47 = vadd.f32 %v1038_v33, %v1035_v30  ;;  %v973_v36 = vsel %vm268_vm2, %v971_v35, %v969_v25 }
 0x556   : > { %v998_v48 = vmul.f32 %v2400_v24, %v972_v27  ;;  %v1043_v49 = vmul.f32 %v2414_v53, %v972_v27  ;;  %v1039_v19 = vadd.f32 %v1037_v14, %v1034_v32  ;;  %v997_v10 = vmul.f32 %v2400_v24, %v973_v36 }
 0x557   : > { %v1042_v58 = vmul.f32 %v2414_v53, %v973_v36  ;;  %v977_v61 = vpop.permute.xlu0 %976 }
 0x558   : > { %v1000_v62 = vadd.f32 %v998_v48, %v995_v45  ;;  %v1045_v2 = vadd.f32 %v1043_v49, %v1040_v47  ;;  %v975_v50 = vpop.permute.xlu1 %974  ;;  %v999_v51 = vadd.f32 %v997_v10, %v994_v60 }
 0x559   : > { %v1044_v44 = vadd.f32 %v1042_v58, %v1039_v19  ;;  %v978_v7 = vsel %vm275_vm3, %v975_v50, %v977_v61  ;;  %v979_v8 = vsel %vm275_vm3, %v977_v61, %v975_v50 }
 0x55a   : > { %v1005_v9 = vadd.f32 %v1003_v43, %v1000_v62  ;;  %v1050_v52 = vadd.f32 %v1048_v38, %v1045_v2  ;;  %v1007_v11 = vmul.f32 %v2427_v46, %v978_v7  ;;  %v1008_v12 = vmul.f32 %v2427_v46, %v979_v8 }
 0x55b   : > { %v1004_v56 = vadd.f32 %v1002_v39, %v999_v51  ;;  %v1049_v15 = vadd.f32 %v1047_v41, %v1044_v44  ;;  %v1052_v22 = vmul.f32 %v2438_v37, %v978_v7  ;;  %v1053_v0 = vmul.f32 %v2438_v37, %v979_v8 }
 0x55c   : > { %v1010_v26 = vadd.f32 %v1008_v12, %v1005_v9 }
 0x55d   : > { %v1009_v3 = vadd.f32 %v1007_v11, %v1004_v56  ;;  %v1054_v28 = vadd.f32 %v1052_v22, %v1049_v15  ;;  %v1055_v13 = vadd.f32 %v1053_v0, %v1050_v52 }
 0x55e   : > { %v1014_v63 = vmin.f32 %v1010_v26, 0.0  ;;  %vm1012_vm8 = vcmp.gt.f32.partialorder %v1010_v26, 0.0 }
 0x55f   : > { %v1013_v54 = vmin.f32 %v1009_v3, 0.0  ;;  %v1058_v29 = vmin.f32 %v1054_v28, 0.0  ;;  %v1059_v20 = vmin.f32 %v1055_v13, 0.0  ;;  %vm1011_vm9 = vcmp.gt.f32.partialorder %v1009_v3, 0.0 }
 0x560   : > { %v1017_v40 = vmul.f32 1.442695, %v1014_v63  ;;  %vm1057_vm10 = vcmp.gt.f32.partialorder %v1055_v13, 0.0  ;;  %vm1056_vm11 = vcmp.gt.f32.partialorder %v1054_v28, 0.0 }
 0x561   : > { %v1015_v30 = vmul.f32 1.442695, %v1013_v54  ;;  %v1060_v59 = vmul.f32 1.442695, %v1058_v29  ;;  %v1062_v16 = vmul.f32 1.442695, %v1059_v20 }
 0x562   : > { %1561 = vpow2.f32 %v1017_v40 }
 0x563   : > { %1563 = vpow2.f32 %v1015_v30 }
 0x564   : > { %1565 = vpow2.f32 %v1060_v59 }
 0x565   : > { %1567 = vpow2.f32 %v1062_v16 }
 0x56f   : > { %v1562_v31 = vpop.eup %1561 }
 0x570   : > { %v1564_v32 = vpop.eup %1563  ;;  %v1441_v14 = vadd.f32 -1.0, %v1562_v31 }
 0x571   : > { %v1566_v33 = vpop.eup %1565  ;;  %v1440_v35 = vadd.f32 -1.0, %v1564_v32 }
 0x572   : > { %v1568_v39 = vpop.eup %1567  ;;  %v1022_v41 = vsel %vm1012_vm8, %v1010_v26, %v1441_v14  ;;  %v1442_v47 = vadd.f32 -1.0, %v1566_v33 }
 0x573   : > { %v1024_v25 = vsel %vm261_vm4, %v1022_v41, 0.0  ;;  %v1021_v43 = vsel %vm1011_vm9, %v1009_v3, %v1440_v35  ;;  %v1443_v27 = vadd.f32 -1.0, %v1568_v39 }
 0x574   : > { %1072 = vrot.lane.b32.xlu0 %v1024_v25, %s1690_s5  ;;  %v1023_v45 = vsel %vm258_vm5, %v1021_v43, 0.0  ;;  %v1066_v48 = vsel %vm1056_vm11, %v1054_v28, %v1442_v47  ;;  %v1099_v51 = vmul.f32 %v1024_v25, %v2367_v4  ;;  %v1137_v44 = vmul.f32 %v2369_v57, %v1024_v25 }
 0x575   : > { %1070 = vrot.lane.b32.xlu1 %v1023_v45, %s1690_s5  ;;  %v1067_v36 = vsel %vm1057_vm10, %v1055_v13, %v1443_v27  ;;  %v1068_v60 = vsel %vm258_vm5, %v1066_v48, 0.0  ;;  %v1098_v7 = vmul.f32 %v1023_v45, %v2367_v4  ;;  %v1136_v56 = vmul.f32 %v2369_v57, %v1023_v45 }
 0x576   : > { %v1069_v49 = vsel %vm261_vm4, %v1067_v36, 0.0  ;;  %v1110_v63 = vmul.f32 %v1068_v60, %v2375_v42  ;;  %v1148_v54 = vmul.f32 %v1068_v60, %v2377_v5 }
 0x577   : > { %v1111_v33 = vmul.f32 %v1069_v49, %v2375_v42  ;;  %v1149_v35 = vmul.f32 %v1069_v49, %v2377_v5 }
 0x578   : > { %1078 = vrot.lane.b32.xlu0 %v1024_v25, %s1691_s15 }
 0x579   : > { %1076 = vrot.lane.b32.xlu1 %v1023_v45, %s1691_s15 }
 0x57c   : > { %1084 = vrot.lane.b32.xlu0 %v1069_v49, %s1690_s5 }
 0x57d   : > { %1082 = vrot.lane.b32.xlu1 %v1068_v60, %s1690_s5 }
 0x580   : > { %1090 = vrot.lane.b32.xlu0 %v1069_v49, %s1691_s15 }
 0x581   : > { %1088 = vrot.lane.b32.xlu1 %v1068_v60, %s1691_s15 }
 0x5e6   : > { %v1073_v19 = vpop.permute.xlu0 %1072 }
 0x5e7   : > { %v1071_v10 = vpop.permute.xlu1 %1070 }
 0x5e8   : > { %v1074_v58 = vsel %vm268_vm2, %v1071_v10, %v1073_v19  ;;  %v1075_v61 = vsel %vm268_vm2, %v1073_v19, %v1071_v10 }
 0x5e9   : > { %v1094_v38 = vmul.f32 %v1075_v61, %v2371_v21  ;;  %v1095_v62 = vmul.f32 %v1074_v58, %v2371_v21  ;;  %v1132_v2 = vmul.f32 %v1075_v61, %v2373_v34  ;;  %v1133_v50 = vmul.f32 %v1074_v58, %v2373_v34 }
 0x5ea   : > { %v1079_v8 = vpop.permute.xlu0 %1078 }
 0x5eb   : > { %v1096_v9 = vadd.f32 %v1094_v38, %v2379_v17  ;;  %v1097_v52 = vadd.f32 %v1095_v62, %v2379_v17  ;;  %v1134_v11 = vadd.f32 %v1132_v2, %v2381_v18  ;;  %v1135_v12 = vadd.f32 %v1133_v50, %v2381_v18  ;;  %v1077_v21 = vpop.permute.xlu1 %1076 }
 0x5ec   : > { %v1080_v34 = vsel %vm275_vm3, %v1077_v21, %v1079_v8  ;;  %v1081_v15 = vsel %vm275_vm3, %v1079_v8, %v1077_v21 }
 0x5ed   : > { %v1101_v22 = vadd.f32 %v1099_v51, %v1097_v52  ;;  %v1139_v4 = vadd.f32 %v1137_v44, %v1135_v12  ;;  %v1100_v0 = vadd.f32 %v1098_v7, %v1096_v9  ;;  %v1102_v26 = vmul.f32 %v1080_v34, %v2387_v55 }
 0x5ee   : > { %v1103_v17 = vmul.f32 %v1081_v15, %v2387_v55  ;;  %v1138_v3 = vadd.f32 %v1136_v56, %v1134_v11  ;;  %v1140_v28 = vmul.f32 %v1080_v34, %v2389_v1  ;;  %v1141_v18 = vmul.f32 %v1081_v15, %v2389_v1  ;;  %v1085_v13 = vpop.permute.xlu0 %1084 }
 0x5ef   : > { %v1083_v57 = vpop.permute.xlu1 %1082  ;;  %v1104_v16 = vadd.f32 %v1102_v26, %v1100_v0 }
 0x5f0   : > { %v1105_v29 = vadd.f32 %v1103_v17, %v1101_v22  ;;  %v1086_v20 = vsel %vm268_vm2, %v1083_v57, %v1085_v13  ;;  %v1143_v40 = vadd.f32 %v1141_v18, %v1139_v4  ;;  %v1087_v30 = vsel %vm268_vm2, %v1085_v13, %v1083_v57 }
 0x5f1   : > { %v1107_v55 = vmul.f32 %v1086_v20, %v2400_v24  ;;  %v1145_v59 = vmul.f32 %v1086_v20, %v2414_v53  ;;  %v1142_v1 = vadd.f32 %v1140_v28, %v1138_v3  ;;  %v1106_v31 = vmul.f32 %v1087_v30, %v2400_v24 }
 0x5f2   : > { %v1144_v32 = vmul.f32 %v1087_v30, %v2414_v53  ;;  %v1091_v14 = vpop.permute.xlu0 %1090  ;;  %v1195_v18 = vstv %s1409_s23  ;;  %v1200_v57 = vstv %s1410_s26 }
 0x5f3   : > { %v1109_v39 = vadd.f32 %v1107_v55, %v1105_v29  ;;  %v1147_v41 = vadd.f32 %v1145_v59, %v1143_v40  ;;  %v1089_v25 = vpop.permute.xlu1 %1088  ;;  %v1108_v43 = vadd.f32 %v1106_v31, %v1104_v16  ;;  %v1205_v55 = vstv %s1411_s28 }
 0x5f4   : > { %v1146_v45 = vadd.f32 %v1144_v32, %v1142_v1  ;;  %v1092_v27 = vsel %vm275_vm3, %v1089_v25, %v1091_v14  ;;  %v1093_v47 = vsel %vm275_vm3, %v1091_v14, %v1089_v25 }
 0x5f5   : > { %v1113_v36 = vadd.f32 %v1111_v33, %v1109_v39  ;;  %v1151_v24 = vadd.f32 %v1149_v35, %v1147_v41  ;;  %v1114_v53 = vmul.f32 %v1092_v27, %v2427_v46  ;;  %v1115_v48 = vmul.f32 %v1093_v47, %v2427_v46 }
 0x5f6   : > { %v1112_v42 = vadd.f32 %v1110_v63, %v1108_v43  ;;  %v1150_v60 = vadd.f32 %v1148_v54, %v1146_v45  ;;  %v1152_v5 = vmul.f32 %v1092_v27, %v2438_v37  ;;  %v1153_v49 = vmul.f32 %v1093_v47, %v2438_v37 }
 0x5f7   : > { %v1117_v19 = vadd.f32 %v1115_v48, %v1113_v36  ;;  %v1194_v63 = vstv %s1415_s27  ;;  %v1210_v45 = vstv %s2524_s4  ;;  %v1215_v47 = vstv %s2526_s3 }
 0x5f8   : > { %v1116_v10 = vadd.f32 %v1114_v53, %v1112_v42  ;;  %v1154_v58 = vadd.f32 %v1152_v5, %v1150_v60  ;;  %v1155_v61 = vadd.f32 %v1153_v49, %v1151_v24 }
 0x5f9   : > { %v1121_v38 = vmin.f32 %v1117_v19, 0.0  ;;  %vm1119_vm12 = vcmp.gt.f32.partialorder %v1117_v19, 0.0 }
 0x5fa   : > { %v1120_v62 = vmin.f32 %v1116_v10, 0.0  ;;  %v1158_v2 = vmin.f32 %v1154_v58, 0.0  ;;  %v1159_v50 = vmin.f32 %v1155_v61, 0.0  ;;  %vm1118_vm13 = vcmp.gt.f32.partialorder %v1116_v10, 0.0 }
 0x5fb   : > { %v1124_v51 = vmul.f32 1.442695, %v1121_v38  ;;  %vm1157_vm14 = vcmp.gt.f32.partialorder %v1155_v61, 0.0  ;;  %vm1156_vm15 = vcmp.gt.f32.partialorder %v1154_v58, 0.0 }
 0x5fc   : > { %v1122_v44 = vmul.f32 1.442695, %v1120_v62  ;;  %v1160_v7 = vmul.f32 1.442695, %v1158_v2  ;;  %v1162_v8 = vmul.f32 1.442695, %v1159_v50 }
 0x5fd   : > { %1569 = vpow2.f32 %v1124_v51 }
 0x5fe   : > { %1571 = vpow2.f32 %v1122_v44 }
 0x5ff   : > { %1573 = vpow2.f32 %v1160_v7 }
 0x600   : > { %1575 = vpow2.f32 %v1162_v8 }
 0x60a   : > { %v1570_v46 = vpop.eup %1569 }
 0x60b   : > { %v1572_v9 = vpop.eup %1571  ;;  %v1445_v52 = vadd.f32 -1.0, %v1570_v46 }
 0x60c   : > { %v1574_v37 = vpop.eup %1573  ;;  %v1444_v11 = vadd.f32 -1.0, %v1572_v9 }
 0x60d   : > { %v1576_v12 = vpop.eup %1575  ;;  %v1129_v21 = vsel %vm1119_vm12, %v1117_v19, %v1445_v52  ;;  %v1446_v4 = vadd.f32 -1.0, %v1574_v37 }
 0x60e   : > { %v1131_v56 = vsel %vm261_vm4, %v1129_v21, 0.0  ;;  %v1128_v34 = vsel %vm1118_vm13, %v1116_v10, %v1444_v11  ;;  %v1447_v22 = vadd.f32 -1.0, %v1576_v12 }
 0x60f   : > { %1172 = vrot.lane.b32.xlu0 %v1131_v56, %s1690_s5  ;;  %v1130_v15 = vsel %vm258_vm5, %v1128_v34, 0.0  ;;  %v1166_v26 = vsel %vm1156_vm15, %v1154_v58, %v1446_v4  ;;  %v1202_v59 = vmul.f32 %v1200_v57, %v1131_v56 }
 0x610   : > { %1170 = vrot.lane.b32.xlu1 %v1130_v15, %s1690_s5  ;;  %v1167_v0 = vsel %vm1157_vm14, %v1155_v61, %v1447_v22  ;;  %v1168_v3 = vsel %vm258_vm5, %v1166_v26, 0.0  ;;  %v1201_v16 = vmul.f32 %v1200_v57, %v1130_v15 }
 0x611   : > { %v1169_v17 = vsel %vm261_vm4, %v1167_v0, 0.0  ;;  %v1216_v10 = vmul.f32 %v1215_v47, %v1168_v3 }
 0x612   : > { %v1217_v19 = vmul.f32 %v1215_v47, %v1169_v17 }
 0x613   : > { %1178 = vrot.lane.b32.xlu0 %v1131_v56, %s1691_s15 }
 0x614   : > { %1176 = vrot.lane.b32.xlu1 %v1130_v15, %s1691_s15 }
 0x617   : > { %1184 = vrot.lane.b32.xlu0 %v1169_v17, %s1690_s5 }
 0x618   : > { %1182 = vrot.lane.b32.xlu1 %v1168_v3, %s1690_s5  ;;  %s2532_s5 = sld [smem:[#allocation3 + $0x45]] }
 0x61b   : > { %1190 = vrot.lane.b32.xlu0 %v1169_v17, %s1691_s15 }
 0x61c   : > { %1188 = vrot.lane.b32.xlu1 %v1168_v3, %s1691_s15  ;;  %s1449_s15 = sshll.u32 %s1729_s13, 7  ;;  %s1692_s13 = smov [#allocation8]  }
 0x61d   : > { %s2561_s19 = scalar_lea.hbm %s2601_s2, %s1449_s15  ;;  %s1620_s30 = sshll.u32 %s1692_s13, 4  ;;  %s1621_s30 = int_to_ptr.vmem [resolvable:$false] %s1620_s30 }
 0x61e   : > { %v1220_v49 = vstv %s2532_s5  ;;  %p1623_p11 = scmp.lt.s32.totalorder %s1255_s7, %s1621_s30 }
 0x681   : > { %v1173_v28 = vpop.permute.xlu0 %1172 }
 0x682   : > { %v1171_v13 = vpop.permute.xlu1 %1170 }
 0x683   : > { %v1174_v54 = vsel %vm268_vm2, %v1171_v13, %v1173_v28  ;;  %v1175_v29 = vsel %vm268_vm2, %v1173_v28, %v1171_v13 }
 0x684   : > { %v1196_v20 = vmul.f32 %v1195_v18, %v1175_v29  ;;  %v1197_v40 = vmul.f32 %v1195_v18, %v1174_v54 }
 0x685   : > { %v1179_v30 = vpop.permute.xlu0 %1178 }
 0x686   : > { %v1198_v1 = vadd.f32 %v1196_v20, %v1194_v63  ;;  %v1199_v31 = vadd.f32 %v1197_v40, %v1194_v63  ;;  %v1177_v32 = vpop.permute.xlu1 %1176 }
 0x687   : > { %v1180_v14 = vsel %vm275_vm3, %v1177_v32, %v1179_v30  ;;  %v1181_v33 = vsel %vm275_vm3, %v1179_v30, %v1177_v32 }
 0x688   : > { %v1204_v35 = vadd.f32 %v1202_v59, %v1199_v31  ;;  %v1203_v39 = vadd.f32 %v1201_v16, %v1198_v1  ;;  %v1206_v41 = vmul.f32 %v1205_v55, %v1180_v14  ;;  %v1207_v25 = vmul.f32 %v1205_v55, %v1181_v33 }
 0x689   : > { %v1185_v43 = vpop.permute.xlu0 %1184 }
 0x68a   : > { %v1183_v27 = vpop.permute.xlu1 %1182  ;;  %v1208_v53 = vadd.f32 %v1206_v41, %v1203_v39  ;;  %v1209_v48 = vadd.f32 %v1207_v25, %v1204_v35 }
 0x68b   : > { %v1186_v36 = vsel %vm268_vm2, %v1183_v27, %v1185_v43  ;;  %v1187_v24 = vsel %vm268_vm2, %v1185_v43, %v1183_v27 }
 0x68c   : > { %v1211_v42 = vmul.f32 %v1210_v45, %v1187_v24  ;;  %v1212_v60 = vmul.f32 %v1210_v45, %v1186_v36 }
 0x68d   : > { %v1191_v5 = vpop.permute.xlu0 %1190 }
 0x68e   : > { %v1213_v58 = vadd.f32 %v1211_v42, %v1208_v53  ;;  %v1214_v61 = vadd.f32 %v1212_v60, %v1209_v48  ;;  %v1189_v38 = vpop.permute.xlu1 %1188 }
 0x68f   : > { %v1192_v62 = vsel %vm275_vm3, %v1189_v38, %v1191_v5  ;;  %v1193_v2 = vsel %vm275_vm3, %v1191_v5, %v1189_v38 }
 0x690   : > { %v1219_v50 = vadd.f32 %v1217_v19, %v1214_v61  ;;  %v1218_v51 = vadd.f32 %v1216_v10, %v1213_v58  ;;  %v1221_v44 = vmul.f32 %v1220_v49, %v1192_v62  ;;  %v1222_v7 = vmul.f32 %v1220_v49, %v1193_v2 }
 0x692   : > { %v1223_v8 = vadd.f32 %v1221_v44, %v1218_v51  ;;  %v1224_v46 = vadd.f32 %v1222_v7, %v1219_v50 }
 0x694   : > { %v1225_v9 = vsel %vm258_vm5, %v1223_v8, 0.0  ;;  %v1226_v52 = vsel %vm261_vm4, %v1224_v46, 0.0 }
 0x695   : > { %1227 = vst [vmem:[#allocation2] sm:$0xff] %v1225_v9  ;;  %1228 = vst [vmem:[#allocation2 + $0x8] sm:$0xff] %v1226_v52  ;;  %1235 = vrot.lane.b32.xlu0 %v1226_v52, %s1688_s17  ;;  %1233 = vrot.lane.b32.xlu1 %v1225_v9, %s1688_s17  ;;  %s1622_s17 = scalar_lea.vmem %s1621_s30, 256 }
 0x696   : > { %p1624_p0 = scmp.lt.s32.totalorder %s1622_s17, %s1616_s21 }
 0x698   : > { %p1625_p3 = por %p1624_p0, %p1623_p11 }
 0x69a   : > { %p1626_p5 = pnand %p1625_p3, %p1619_p10 }
 0x707   : > { %v1236_v37 = vpop.permute.xlu0 %1235  ;;  %v1234_v11 = vpop.permute.xlu1 %1233 }
 0x708   : > { %v1237_v6 = vsel %vm251_vm1, %v1234_v11, %v1236_v37 }
 0x709   : > { %1239 = vst [vmem:[%s170_s6] sm:$0xff] %v1237_v6 }
 0x70a   : > { %1629 = shalt.err (!%p1626_p5)
}
 0x70b   : > { %s1630_s22 = scalar_lea.hbm %s2561_s19, 128  ;;  %s1634_s26 = scalar_lea.hbm %s2601_s2, 256 }
 0x70c   : > { %p1631_p2 = scmp.ne.s32.totalorder %s2561_s19, %s1630_s22  ;;  %p1635_p9 = scmp.lt.s32.totalorder %s2561_s19, %s2601_s2 }
 0x70d   : > { %p1636_p1 = scmp.lt.s32.totalorder %s1634_s26, %s1630_s22 }
 0x70e   : > { %p1632_p12 = pnand %p1631_p2, %p2615_p8 }
 0x70f   : > { %p1637_p4 = por %p1636_p1, %p1635_p9 }
 0x710   : > { %p1633_p13 = pneg %p1632_p12 }
 0x712   : > { %p1638_p6 = pnand %p1637_p4, %p1633_p13 }
 0x714   : > { %1641 = shalt.err (!%p1638_p6)
}
 0x715   : > { %1458 = dma.vmem_to_hbm [thread:$0]  (%p2615_p8), %s1255_s7, 128, %s2561_s19, %s1241_s20  }
 0x716 PF: > { %s1266_s4 = sand.u32 1, %s1672_s9   ;;  %p2616_p7 = scmp.ne.s32.totalorder %s2607_s16, 0 }
 0x717   : > { %p2617_p10 = scmp.ge.s32.totalorder %s1684_s12, 2  ;;  %s1267_s3 = scalar_lea.sflag [#allocation5], %s1266_s4 }
 0x719   : > { %p1469_p11 = pnand %p2617_p10, %p2616_p7 }
 0x71b   : > { %p1470_p0 = pneg %p1469_p11 }
 0x71d   : > { %1667 = dma.done.wait (%p1470_p0), %s1267_s3, 128  }
 0x71e   : > { %1669 = vsyncadd (%p1470_p0), %s1267_s3, 4294967168  ;;  %p16_p3 = scmp.ge.s32.totalorder %s1754_s18, 4   ;;  %s2618_s9 = smov %s1676_s10 }
 0x71f   : > { %s2619_s10 = smov %s1680_s11  ;;  %s2620_s11 = smov %s1771_s24 }
 0x720   : > { %s2621_s12 = smov %s1754_s18  ;;  %18 = sbr.rel (!%p16_p3) target bundleno = 6 (0x6), region = 78 }
 0x725   :  { %1272 = vsyncpa [#allocation4], 1 }
 0x726   :  { %1274 = vsyncpa [#allocation4 + $0x1], 1 }
 0x727   :  { %1275 = vsyncpa [#allocation5], 1 }
 0x728   :  { %1277 = vsyncpa [#allocation5 + $0x1], 1 }
 0x729   :  { %1278 = vsyncpa [#allocation6], 1 }
 0x72a   :  { %1280 = vsyncpa [#allocation6 + $0x1], 1 }

</bundles_post_ra>
